<compile_context>
chip_gen: v6e
topology: v6e:2x2x1
jax: 0.10.0
libtpu: 0.0.40
codegen_flags: <defaults>
</compile_context>

<pallas_src>
import functools

import jax
import jax.numpy as jnp
from jax.experimental import pallas as pl
from jax.experimental.pallas import tpu as pltpu

D_IN = 512 + 256          # 768
D_H1 = 1024
D_H2 = 2048
D_OUT = 64 * 64 * 5       # 20480
LN_EPS = 1e-5


@functools.lru_cache(maxsize=None)
def _vmem_limit_bytes():
    """Per-generation scoped-VMEM budget (~3/4 of physical, capped at 100 MiB)."""
    try:
        phys = int(pltpu.get_tpu_info().vmem_capacity_bytes)
    except Exception:
        phys = 64 * 1024 * 1024          # assume the smallest (v7x per-TC)
    return int(min(phys * 3 // 4, 100 * 1024 * 1024))


def _compiler_params(sem):
    return pltpu.CompilerParams(dimension_semantics=sem,
                                vmem_limit_bytes=_vmem_limit_bytes())


def _buffered_spec(block_shape, index_map, buffer_count=3):
    """BlockSpec with deeper pipelining where the API supports it."""
    try:
        return pl.BlockSpec(block_shape, index_map,
                            pipeline_mode=pl.Buffered(buffer_count))
    except TypeError:                      # older BlockSpec w/o pipeline_mode
        return pl.BlockSpec(block_shape, index_map)


# ----------------------------------------------------------------------------
# Kernel 1: stacked-pair  Linear -> ReLU -> LayerNorm   (fc1 | fc1_2, grid=(2,))
# ----------------------------------------------------------------------------
def _pair_lin_relu_ln_kernel(x_ref, w_ref, b_ref, g_ref, bt_ref, o_ref, *, eps):
    x = x_ref[...].astype(jnp.bfloat16)
    y = jnp.dot(x, w_ref[0], preferred_element_type=jnp.float32) + b_ref[0]
    y = jnp.maximum(y, 0.0)
    mean = jnp.mean(y, axis=-1, keepdims=True)
    var = jnp.mean(jnp.square(y - mean), axis=-1, keepdims=True)
    yn = (y - mean) * jax.lax.rsqrt(var + eps)               # EUP rsqrt
    o_ref[...] = (yn * g_ref[...] + bt_ref[...]).astype(o_ref.dtype)


def fc1_pair(x, w_stack, b_stack, gamma, beta):
    B, K = x.shape
    G, K2, N = w_stack.shape
    assert G == 2 and K2 == K
    kernel = functools.partial(_pair_lin_relu_ln_kernel, eps=LN_EPS)
    return pl.pallas_call(
        kernel,
        out_shape=jax.ShapeDtypeStruct((B, G * N), jnp.bfloat16),
        grid_spec=pltpu.PrefetchScalarGridSpec(
            num_scalar_prefetch=0,
            grid=(G,),
            in_specs=[
                pl.BlockSpec((B, K), lambda g: (0, 0)),        # shared input
                pl.BlockSpec((1, K, N), lambda g: (g, 0, 0)),  # per-branch W
                pl.BlockSpec((1, 1, N), lambda g: (g, 0, 0)),  # per-branch b
                pl.BlockSpec((1, N), lambda g: (0, 0)),        # shared gamma
                pl.BlockSpec((1, N), lambda g: (0, 0)),        # shared beta
            ],
            out_specs=pl.BlockSpec((B, N), lambda g: (0, g)),
        ),
        compiler_params=_compiler_params(("parallel",)),
    )(x, w_stack, b_stack, gamma, beta)


# ----------------------------------------------------------------------------
# Kernel 2: stacked-pair  Linear -> ReLU -> LayerNorm -> + (shortcut matmul)
# The shortcut1|shortcut1_2 projection of the ORIGINAL input is folded into
# the epilogue (residual is added after the LN affine, as in the reference).
# ----------------------------------------------------------------------------
def _pair_lin_relu_ln_res_kernel(h_ref, w_ref, b_ref, g_ref, bt_ref,
                                 x0_ref, scw_ref, scb_ref, o_ref, *, eps):
    h = h_ref[...].astype(jnp.bfloat16)
    y = jnp.dot(h, w_ref[0], preferred_element_type=jnp.float32) + b_ref[0]
    y = jnp.maximum(y, 0.0)
    mean = jnp.mean(y, axis=-1, keepdims=True)
    var = jnp.mean(jnp.square(y - mean), axis=-1, keepdims=True)
    out = (y - mean) * jax.lax.rsqrt(var + eps) * g_ref[...] + bt_ref[...]
    sc = jnp.dot(x0_ref[...].astype(jnp.bfloat16), scw_ref[0],
                 preferred_element_type=jnp.float32) + scb_ref[0]
    o_ref[...] = (out + sc).astype(o_ref.dtype)


def fc2_pair_shortcut(h, w_stack, b_stack, gamma, beta, x0, scw_stack, scb_stack):
    B = h.shape[0]
    G, K, N = w_stack.shape
    assert G == 2 and h.shape == (B, G * K)
    K0 = x0.shape[1]
    kernel = functools.partial(_pair_lin_relu_ln_res_kernel, eps=LN_EPS)
    return pl.pallas_call(
        kernel,
        out_shape=jax.ShapeDtypeStruct((B, G * N), jnp.bfloat16),
        grid_spec=pltpu.PrefetchScalarGridSpec(
            num_scalar_prefetch=0,
            grid=(G,),
            in_specs=[
                pl.BlockSpec((B, K), lambda g: (0, g)),          # per-branch h
                pl.BlockSpec((1, K, N), lambda g: (g, 0, 0)),    # fc2 / fc2_2 W
                pl.BlockSpec((1, 1, N), lambda g: (g, 0, 0)),    # fc2 / fc2_2 b
                pl.BlockSpec((1, N), lambda g: (0, 0)),          # shared gamma
                pl.BlockSpec((1, N), lambda g: (0, 0)),          # shared beta
                pl.BlockSpec((B, K0), lambda g: (0, 0)),         # original x
                pl.BlockSpec((1, K0, N), lambda g: (g, 0, 0)),   # shortcut W
                pl.BlockSpec((1, 1, N), lambda g: (g, 0, 0)),    # shortcut b
            ],
            out_specs=pl.BlockSpec((B, N), lambda g: (0, g)),
        ),
        compiler_params=_compiler_params(("parallel",)),
    )(h, w_stack, b_stack, gamma, beta, x0, scw_stack, scb_stack)


# ----------------------------------------------------------------------------
# Kernel 3: fused q/k/v projection — one [2048, 6144] weight stream, SIX
# 1024-wide output tiles (balanced 3/3 megacore split).  Tiles 0-1 (q) read
# x1, tiles 2-5 (k, v) read x2 from the wide activation x12 = (x1 | x2).
# ----------------------------------------------------------------------------
def _linear_kernel(x_ref, w_ref, b_ref, o_ref):
    y = jnp.dot(x_ref[...], w_ref[...], preferred_element_type=jnp.float32)
    o_ref[...] = (y + b_ref[...]).astype(o_ref.dtype)


def qkv_linear(x12, w_qkv, b_qkv):
    B = x12.shape[0]
    K, N = w_qkv.shape
    d = N // 3
    tn = 1024
    assert N == 6 * tn and d == 2 * tn and x12.shape == (B, 2 * d)
    return pl.pallas_call(
        _linear_kernel,
        out_shape=jax.ShapeDtypeStruct((B, N), jnp.bfloat16),
        grid_spec=pltpu.PrefetchScalarGridSpec(
            num_scalar_prefetch=0,
            grid=(6,),
            in_specs=[
                # j=0,1 -> x1 (block 0), j=2..5 -> x2 (block 1)
                pl.BlockSpec((B, d), lambda j: (0, (j + 2) // 4)),
                pl.BlockSpec((K, tn), lambda j: (0, j)),
                pl.BlockSpec((1, tn), lambda j: (0, j)),
            ],
            out_specs=pl.BlockSpec((B, tn), lambda j: (0, j)),
        ),
        compiler_params=_compiler_params(("parallel",)),
    )(x12, w_qkv, b_qkv)


# ----------------------------------------------------------------------------
# Kernel 4: cross-attention FUSED into the int8-quantised projection.
# qkv ([B, 3d] bf16, ~96 KB) stays resident in VMEM; the tiny 8x8 attention
# is recomputed per output tile (cheaper & safer than a pl.when-initialised
# scratch, which would break under a megacore-"parallel" grid split).
# ----------------------------------------------------------------------------
def _attn_proj_kernel(qkv_ref, w_ref, scale_ref, b_ref, o_ref, *, d, att_scale):
    qkv = qkv_ref[...]
    q = qkv[:, :d]
    k = qkv[:, d:2 * d]
    v = qkv[:, 2 * d:]
    s = jax.lax.dot_general(q, k, (((1,), (1,)), ((), ())),
                            preferred_element_type=jnp.float32) * att_scale
    s = s - jnp.max(s, axis=-1, keepdims=True)
    p = jnp.exp(s)
    p = p * pl.reciprocal(jnp.sum(p, axis=-1, keepdims=True), approx=True)
    a = jnp.dot(p.astype(jnp.bfloat16), v,
                preferred_element_type=jnp.float32).astype(jnp.bfloat16)
    # int8 weight tile -> bf16 values; per-output-column scale applied to the
    # f32 result (mathematically identical to dequantising the weights).
    w = w_ref[...].astype(jnp.bfloat16)
    y = jnp.dot(a, w, preferred_element_type=jnp.float32)
    o_ref[...] = (y * scale_ref[...] + b_ref[...]).astype(o_ref.dtype)


def attention_projection(qkv, w_q8, scale, bias, *, tn=2048):
    B, threeD = qkv.shape
    d = threeD // 3
    K, N = w_q8.shape
    assert K == d and N % tn == 0
    kernel = functools.partial(_attn_proj_kernel, d=d, att_scale=1.0 / (d ** 0.5))
    return pl.pallas_call(
        kernel,
        out_shape=jax.ShapeDtypeStruct((B, N), jnp.float32),
        grid_spec=pltpu.PrefetchScalarGridSpec(
            num_scalar_prefetch=0,
            grid=(N // tn,),
            in_specs=[
                pl.BlockSpec((B, threeD), lambda j: (0, 0)),     # resident qkv
                _buffered_spec((K, tn), lambda j: (0, j), 3),    # int8 W stream
                pl.BlockSpec((1, tn), lambda j: (0, j)),         # per-col scale
                pl.BlockSpec((1, tn), lambda j: (0, j)),         # bias
            ],
            out_specs=pl.BlockSpec((B, tn), lambda j: (0, j)),
        ),
        compiler_params=_compiler_params(("parallel",)),
    )(qkv, w_q8, scale, bias)


# ----------------------------------------------------------------------------
# Parameters (deterministic, synthetic).  bf16 weights except the projection,
# which is int8 with per-output-column f32 scales.
# ----------------------------------------------------------------------------
def _quantize_int8_per_col(w):
    amax = jnp.max(jnp.abs(w), axis=0, keepdims=True)
    scale = jnp.where(amax == 0, 1.0, amax / 127.0).astype(jnp.float32)
    q = jnp.clip(jnp.round(w / scale), -127, 127).astype(jnp.int8)
    return q, scale


def init_params(key):
    def lin(k, fi, fo, scale=0.02):
        kw, kb = jax.random.split(k)
        w = jax.random.normal(kw, (fi, fo), jnp.float32) * scale
        b = jax.random.normal(kb, (fo,), jnp.float32) * scale
        return w, b

    ks = jax.random.split(key, 10)
    fc1_w, fc1_b = lin(ks[0], D_IN, D_H1)
    fc2_w, fc2_b = lin(ks[1], D_H1, D_H2)
    sc1_w, sc1_b = lin(ks[2], D_IN, D_H2)
    fc1b_w, fc1b_b = lin(ks[3], D_IN, D_H1)
    fc2b_w, fc2b_b = lin(ks[4], D_H1, D_H2)
    sc2_w, sc2_b = lin(ks[5], D_IN, D_H2)
    q_w, q_b = lin(ks[6], D_H2, D_H2)
    k_w, k_b = lin(ks[7], D_H2, D_H2)
    v_w, v_b = lin(ks[8], D_H2, D_H2)
    pr_w, pr_b = lin(ks[9], D_H2, D_OUT)

    pr_q, pr_scale = _quantize_int8_per_col(pr_w)

    return {
        "fc1_w": jnp.stack([fc1_w, fc1b_w]).astype(jnp.bfloat16),   # [2,768,1024]
        "fc1_b": jnp.stack([fc1_b, fc1b_b]).reshape(2, 1, D_H1),
        "fc2_w": jnp.stack([fc2_w, fc2b_w]).astype(jnp.bfloat16),   # [2,1024,2048]
        "fc2_b": jnp.stack([fc2_b, fc2b_b]).reshape(2, 1, D_H2),
        "sc_w": jnp.stack([sc1_w, sc2_w]).astype(jnp.bfloat16),     # [2,768,2048]
        "sc_b": jnp.stack([sc1_b, sc2_b]).reshape(2, 1, D_H2),
        "qkv_w": jnp.concatenate([q_w, k_w, v_w], axis=1).astype(jnp.bfloat16),
        "qkv_b": jnp.concatenate([q_b, k_b, v_b]).reshape(1, 3 * D_H2),
        # TODO(synk): on v7x the projection could be native fp8 instead of int8.
        "proj_wq": pr_q,                                            # [2048,20480] i8
        "proj_scale": pr_scale,                                     # [1,20480] f32
        "proj_b": pr_b.reshape(1, D_OUT),
        "norm1_g": jnp.ones((1, D_H1), jnp.float32),
        "norm1_b": jnp.zeros((1, D_H1), jnp.float32),
        "norm2_g": jnp.ones((1, D_H2), jnp.float32),
        "norm2_b": jnp.zeros((1, D_H2), jnp.float32),
    }


# ----------------------------------------------------------------------------
# Forward pass (Dropout(0.3) in eval mode = identity)
# ----------------------------------------------------------------------------
def generative_head(x, p):
    # fc1 / fc1_2 -> ReLU -> norm1
    h = fc1_pair(x, p["fc1_w"], p["fc1_b"], p["norm1_g"], p["norm1_b"])   # [B,2048] bf16
    # fc2 / fc2_2 -> ReLU -> norm2 -> + (shortcut1 / shortcut1_2)(x)
    x12 = fc2_pair_shortcut(h, p["fc2_w"], p["fc2_b"], p["norm2_g"], p["norm2_b"],
                            x, p["sc_w"], p["sc_b"])                      # [B,4096] bf16
    # q = Wq(x1), k = Wk(x2), v = Wv(x2)
    qkv = qkv_linear(x12, p["qkv_w"], p["qkv_b"])                         # [B,6144] bf16
    # softmax(q k^T / sqrt(d)) v, fused into the 2048x20480 projection
    return attention_projection(qkv, p["proj_wq"], p["proj_scale"], p["proj_b"])


# ----------------------------------------------------------------------------
# Pure-JAX reference (f32 math with the same bf16 / dequantised-int8 weights)
# ----------------------------------------------------------------------------
def reference_forward(x, p):
    def ln(y, g, b):
        mean = jnp.mean(y, axis=-1, keepdims=True)
        var = jnp.mean(jnp.square(y - mean), axis=-1, keepdims=True)
        return (y - mean) * jax.lax.rsqrt(var + LN_EPS) * g + b

    f32 = lambda a: a.astype(jnp.float32)
    sc1 = x @ f32(p["sc_w"][0]) + p["sc_b"][0]
    sc2 = x @ f32(p["sc_w"][1]) + p["sc_b"][1]
    h1 = ln(jax.nn.relu(x @ f32(p["fc1_w"][0]) + p["fc1_b"][0]),
            p["norm1_g"], p["norm1_b"])
    h2 = ln(jax.nn.relu(x @ f32(p["fc1_w"][1]) + p["fc1_b"][1]),
            p["norm1_g"], p["norm1_b"])
    x1 = ln(jax.nn.relu(h1 @ f32(p["fc2_w"][0]) + p["fc2_b"][0]),
            p["norm2_g"], p["norm2_b"]) + sc1
    x2 = ln(jax.nn.relu(h2 @ f32(p["fc2_w"][1]) + p["fc2_b"][1]),
            p["norm2_g"], p["norm2_b"]) + sc2
    wq, wk, wv = (f32(p["qkv_w"][:, :D_H2]),
                  f32(p["qkv_w"][:, D_H2:2 * D_H2]),
                  f32(p["qkv_w"][:, 2 * D_H2:]))
    bq, bk, bv = (p["qkv_b"][:, :D_H2], p["qkv_b"][:, D_H2:2 * D_H2],
                  p["qkv_b"][:, 2 * D_H2:])
    q, k, v = x1 @ wq + bq, x2 @ wk + bk, x2 @ wv + bv
    s = (q @ k.T) * (1.0 / (D_H2 ** 0.5))
    a = jax.nn.softmax(s, axis=-1) @ v
    w_proj = p["proj_wq"].astype(jnp.float32) * p["proj_scale"]
    return a @ w_proj + p["proj_b"]


if __name__ == "__main__":
    B = 8
    key = jax.random.PRNGKey(0)
    kp, kx = jax.random.split(key)
    params = init_params(kp)
    x = jax.random.normal(kx, (B, D_IN), jnp.float32)

    out = jax.block_until_ready(generative_head(x, params))
    assert out.shape == (B, D_OUT), out.shape
    assert out.dtype == jnp.float32
    assert bool(jnp.all(jnp.isfinite(out)))

    # loose numerical sanity vs pure-JAX reference (bf16 activations / MXU
    # rounding are the only differences; the int8 proj weights are identical
    # on both sides because the reference dequantises the same tensors)
    ref = jax.block_until_ready(reference_forward(x, params))
    rel_err = float(jnp.max(jnp.abs(out - ref)) / (jnp.max(jnp.abs(ref)) + 1e-6))
    assert rel_err < 0.08, rel_err

    print("KERNEL_OK")
</pallas_src>

<mosaic_0001>
module attributes {stable_mosaic.version = 11 : i64} {
  func.func @_pair_lin_relu_ln_kernel(%arg0: i32, %arg1: memref<8x768xf32, #tpu.memory_space<vmem>>, %arg2: memref<1x768x1024xbf16, #tpu.memory_space<vmem>>, %arg3: memref<1x1x1024xf32, #tpu.memory_space<vmem>>, %arg4: memref<1x1024xf32, #tpu.memory_space<vmem>>, %arg5: memref<1x1024xf32, #tpu.memory_space<vmem>>, %arg6: memref<8x1024xbf16, #tpu.memory_space<vmem>>) attributes {dimension_semantics = [#tpu.dimension_semantics<parallel>], iteration_bounds = array<i64: 2>, scalar_prefetch = 0 : i64, scratch_operands = 0 : i64, tpu.core_type = #tpu.core_type<tc>, window_params = [{pipeline_mode = #tpu.pipeline_mode<synchronous>, transform_indices = @transform_0, window_bounds = array<i64: 8, 768>}, {transform_indices = @transform_1, window_bounds = array<i64: 1, 768, 1024>}, {transform_indices = @transform_2, window_bounds = array<i64: 1, 1, 1024>}, {pipeline_mode = #tpu.pipeline_mode<synchronous>, transform_indices = @transform_3, window_bounds = array<i64: 1, 1024>}, {pipeline_mode = #tpu.pipeline_mode<synchronous>, transform_indices = @transform_4, window_bounds = array<i64: 1, 1024>}, {transform_indices = @transform_5, window_bounds = array<i64: 8, 1024>}]} {
    %c0 = arith.constant 0 : index
    %c0_0 = arith.constant 0 : index
    %0 = vector.load %arg1[%c0, %c0_0] : memref<8x768xf32, #tpu.memory_space<vmem>>, vector<8x768xf32>
    %1 = arith.truncf %0 : vector<8x768xf32> to vector<8x768xbf16>
    %c0_1 = arith.constant 0 : index
    %c0_2 = arith.constant 0 : index
    %c0_3 = arith.constant 0 : index
    %2 = vector.load %arg2[%c0_1, %c0_2, %c0_3] : memref<1x768x1024xbf16, #tpu.memory_space<vmem>>, vector<1x768x1024xbf16>
    %3 = vector.shape_cast %2 : vector<1x768x1024xbf16> to vector<768x1024xbf16>
    %cst = arith.constant dense<0.000000e+00> : vector<8x1024xf32>
    %4 = tpu.matmul %1, %3, %cst {dimension_numbers = #tpu.dot_dimension_numbers<[1], [0], [0], [1], [0, 0, 1, 1], [], []>} : vector<8x768xbf16>, vector<768x1024xbf16>, vector<8x1024xf32> -> vector<8x1024xf32>
    %c0_4 = arith.constant 0 : index
    %c0_5 = arith.constant 0 : index
    %c0_6 = arith.constant 0 : index
    %5 = vector.load %arg3[%c0_4, %c0_5, %c0_6] : memref<1x1x1024xf32, #tpu.memory_space<vmem>>, vector<1x1x1024xf32>
    %6 = vector.shape_cast %5 : vector<1x1x1024xf32> to vector<1x1024xf32>
    %7 = vector.broadcast %6 : vector<1x1024xf32> to vector<8x1024xf32>
    %8 = arith.addf %4, %7 : vector<8x1024xf32>
    %cst_7 = arith.constant 0.000000e+00 : f32
    %9 = vector.broadcast %cst_7 : f32 to vector<8x1024xf32>
    %10 = arith.maximumf %8, %9 : vector<8x1024xf32>
    %cst_8 = arith.constant dense<0.000000e+00> : vector<8xf32>
    %11 = vector.multi_reduction <add>, %10, %cst_8 [1] : vector<8x1024xf32> to vector<8xf32>
    %12 = vector.shape_cast %11 : vector<8xf32> to vector<8x1xf32>
    %cst_9 = arith.constant 1.024000e+03 : f32
    %13 = vector.broadcast %cst_9 : f32 to vector<8x1xf32>
    %14 = arith.divf %12, %13 : vector<8x1xf32>
    %15 = vector.broadcast %14 : vector<8x1xf32> to vector<8x1024xf32>
    %16 = arith.subf %10, %15 : vector<8x1024xf32>
    %17 = arith.mulf %16, %16 : vector<8x1024xf32>
    %cst_10 = arith.constant dense<0.000000e+00> : vector<8xf32>
    %18 = vector.multi_reduction <add>, %17, %cst_10 [1] : vector<8x1024xf32> to vector<8xf32>
    %19 = vector.shape_cast %18 : vector<8xf32> to vector<8x1xf32>
    %cst_11 = arith.constant 1.024000e+03 : f32
    %20 = vector.broadcast %cst_11 : f32 to vector<8x1xf32>
    %21 = arith.divf %19, %20 : vector<8x1xf32>
    %22 = vector.broadcast %14 : vector<8x1xf32> to vector<8x1024xf32>
    %23 = arith.subf %10, %22 : vector<8x1024xf32>
    %cst_12 = arith.constant 9.99999974E-6 : f32
    %24 = vector.broadcast %cst_12 : f32 to vector<8x1xf32>
    %25 = arith.addf %21, %24 : vector<8x1xf32>
    %26 = math.rsqrt %25 : vector<8x1xf32>
    %27 = vector.broadcast %26 : vector<8x1xf32> to vector<8x1024xf32>
    %28 = arith.mulf %23, %27 : vector<8x1024xf32>
    %c0_13 = arith.constant 0 : index
    %c0_14 = arith.constant 0 : index
    %29 = vector.load %arg4[%c0_13, %c0_14] : memref<1x1024xf32, #tpu.memory_space<vmem>>, vector<1x1024xf32>
    %30 = vector.broadcast %29 : vector<1x1024xf32> to vector<8x1024xf32>
    %31 = arith.mulf %28, %30 : vector<8x1024xf32>
    %c0_15 = arith.constant 0 : index
    %c0_16 = arith.constant 0 : index
    %32 = vector.load %arg5[%c0_15, %c0_16] : memref<1x1024xf32, #tpu.memory_space<vmem>>, vector<1x1024xf32>
    %33 = vector.broadcast %32 : vector<1x1024xf32> to vector<8x1024xf32>
    %34 = arith.addf %31, %33 : vector<8x1024xf32>
    %35 = arith.truncf %34 : vector<8x1024xf32> to vector<8x1024xbf16>
    %c0_17 = arith.constant 0 : index
    %c0_18 = arith.constant 0 : index
    %36 = vector.load %arg6[%c0_17, %c0_18] : memref<8x1024xbf16, #tpu.memory_space<vmem>>, vector<8x1024xbf16>
    tpu.vector_store %arg6[%c0_17, %c0_18], %35 {strides = array<i32>} : memref<8x1024xbf16, #tpu.memory_space<vmem>>, vector<8x1024xbf16>,
    return
  }
  func.func @transform_0(%arg0: i32) -> (i32, i32) {
    %c0_i32 = arith.constant 0 : i32
    %c0_i32_0 = arith.constant 0 : i32
    %c0_i32_1 = arith.constant 0 : i32
    return %c0_i32, %c0_i32_0 : i32, i32
  }
  func.func @transform_1(%arg0: i32) -> (i32, i32, i32) {
    %c0_i32 = arith.constant 0 : i32
    %c0_i32_0 = arith.constant 0 : i32
    %c0_i32_1 = arith.constant 0 : i32
    return %arg0, %c0_i32, %c0_i32_0 : i32, i32, i32
  }
  func.func @transform_2(%arg0: i32) -> (i32, i32, i32) {
    %c0_i32 = arith.constant 0 : i32
    %c0_i32_0 = arith.constant 0 : i32
    %c0_i32_1 = arith.constant 0 : i32
    return %arg0, %c0_i32, %c0_i32_0 : i32, i32, i32
  }
  func.func @transform_3(%arg0: i32) -> (i32, i32) {
    %c0_i32 = arith.constant 0 : i32
    %c0_i32_0 = arith.constant 0 : i32
    %c0_i32_1 = arith.constant 0 : i32
    return %c0_i32, %c0_i32_0 : i32, i32
  }
  func.func @transform_4(%arg0: i32) -> (i32, i32) {
    %c0_i32 = arith.constant 0 : i32
    %c0_i32_0 = arith.constant 0 : i32
    %c0_i32_1 = arith.constant 0 : i32
    return %c0_i32, %c0_i32_0 : i32, i32
  }
  func.func @transform_5(%arg0: i32) -> (i32, i32) {
    %c0_i32 = arith.constant 0 : i32
    %c0_i32_0 = arith.constant 0 : i32
    return %c0_i32, %arg0 : i32, i32
  }
}

</mosaic_0001>

<bundles_post_ra>
// kernel: tpu_custom_call.1
= control target key start
LH: loop header
LB: loop body
LE: loop exit
PB: predicated region body
PF: predicated region fallthrough
CT: control target
= control target key end

     0   :  { %s4995_s0 = inlined_call_operand.hbm [shape: f32[8,768], index: 0, kind: input, shape index: {}]   ;;  %s4996_s1 = inlined_call_operand.hbm [shape: bf16[2,768,1024], index: 1, kind: input, shape index: {}]   ;;  %s4997_s2 = inlined_call_operand.hbm [shape: f32[2,1,1024], index: 2, kind: input, shape index: {}]   ;;  %s4998_s3 = inlined_call_operand.hbm [shape: f32[1,1024], index: 3, kind: input, shape index: {}]   ;;  %s4999_s4 = inlined_call_operand.hbm [shape: f32[1,1024], index: 4, kind: input, shape index: {}]   ;;  %s5000_s5 = inlined_call_operand.hbm [shape: bf16[8,2048], index: 5, kind: output, shape index: {}]  }
   0x1   :  { %5007 = sst [smem:[#allocation16_spill]] %s4996_s1 }
   0x2   :  { %10 = vsyncpa [#allocation3], 0 }
   0x3   :  { %11 = vsyncpa [#allocation6], 0 }
   0x4   :  { %13 = vsyncpa [#allocation6 + $0x1], 0 }
   0x5   :  { %14 = vsyncpa [#allocation9], 0 }
   0x6   :  { %15 = vsyncpa [#allocation4], 0 }
   0x7   :  { %17 = vsyncpa [#allocation4 + $0x1], 0  ;;  %s4244_s18 = smov 0   ;;  %s4246_s19 = smov 0  }
   0x8   :  { %s4248_s20 = smov 0   ;;  %s4250_s21 = smov 0  }
   0x9 LB: > { %s4265_s22 = sadd.s32 4294967295, %s4204_s21   ;;  %s3494_s23 = sadd.s32 4294967294, %s4204_s21   ;;  %s4204_s21 = sphi %s4250_s21, %s5032_s21   ;;  %s4200_s20 = sphi %s4248_s20, %s5031_s20   ;;  %s4196_s19 = sphi %s4246_s19, %s5030_s19   ;;  %s4192_s18 = sphi %s4244_s18, %s5029_s18  }
   0xa   : > { %p64_p0 = scmp.ne.s32.totalorder %s4196_s19, %s4192_s18  ;;  %p5001_p1 = scmp.eq.s32.totalorder %s4265_s22, 0 }
   0xb   : > { %p162_p3 = scmp.eq.s32.totalorder %s3494_s23, 1  ;;  %p3495_p5 = scmp.ge.s32.totalorder %s4204_s21, 1 }
   0xc   : > { %p4274_p4 = por %p5001_p1, %p64_p0  ;;  %p169_p7 = scmp.lt.s32.totalorder %s4204_s21, 3 }
   0xd   : > { %p4279_p6 = por %p162_p3, %p64_p0  ;;  %s4206_s27 = smov [#allocation8]  }
   0xe   : > { %s5008_s24 = scalar_select %p4274_p4, 1, 0 }
   0xf   : > { %s5009_s25 = scalar_select %p4279_p6, 1, 0 }
  0x10   : > { %p4284_p8 = pnand %p3495_p5, %p169_p7  ;;  %s193_s28 = sshll.u32 %s4206_s27, 4  ;;  %s194_s28 = int_to_ptr.vmem [resolvable:$true] %s193_s28 }
  0x11   : > { %s4292_s29 = sadd.s32 1, %s4204_s21   ;;  %s51_s8 = sadd.s32 1, %s4200_s20 }
  0x12   : > { %s5010_s26 = scalar_select %p4284_p8, 1, 0 }
  0x13   : > { %p3930_p10 = pneg %p4284_p8  ;;  %s48_s6 = ssub.s32 %s4204_s21, %s4292_s29 }
  0x14   : > { %p4302_p12 = scmp.eq.s32.totalorder %s48_s6, 0  ;;  %p58_p13 = scmp.ne.s32.totalorder %s4200_s20, %s4196_s19 }
  0x15   : > { %p4296_p11 = pnand %p3930_p10, %p5001_p1  ;;  %s4009_s9 = scalar_lea.vmem %s194_s28, 128 }
  0x16   : > { %p4010_p3 = scmp.ne.s32.totalorder %s194_s28, %s4009_s9  ;;  %p4017_p10 = scmp.lt.s32.totalorder %s194_s28, %s194_s28 }
  0x17   : > { %p5003_p0 = pneg %p4296_p11  ;;  %p4018_p9 = scmp.lt.s32.totalorder %s4009_s9, %s4009_s9 }
  0x19   : > { %p4012_p5 = pnand %p4010_p3, %p5003_p0  ;;  %p4019_p1 = por %p4018_p9, %p4017_p10 }
  0x1b   : > { %p4013_p7 = pneg %p4012_p5 }
  0x1d   : > { %p4020_p2 = pnand %p4019_p1, %p4013_p7 }
  0x1f   : > { %4023 = shalt.err (!%p4020_p2)
}
  0x20   : > { %3936 = dma.hbm_to_vmem [thread:$0]  (!%p4296_p11), %s4998_s3, 128, %s194_s28, [#allocation9]  }
  0x21   : > { %s4322_s12 = scalar_select %p4302_p12, %s4200_s20, %s51_s8  }
  0x22   : > { %p59_p1 = scmp.eq.s32.totalorder %s4204_s21, 0  ;;  %p5013_p2 = scmp.eq.s32.totalorder %s4265_s22, 1 }
  0x23   : > { %p3954_p3 = scmp.lt.s32.totalorder %s4204_s21, 2  ;;  %s215_s14 = sand.u32 1, %s4204_s21  }
  0x24   : > { %p4330_p9 = por %p5013_p2, %p58_p13  ;;  %p60_p5 = por %p59_p1, %p58_p13 }
  0x25   : > { %s5002_s15 = sand.u32 1, %s4200_s20   ;;  %s3910_s16 = smul.u32 49152, %s4204_s21 }
  0x26   : > { %s5014_s13 = scalar_select %p4330_p9, 1, 0 }
  0x27   : > { %s3909_s17 = smul.u32 3072, %s5002_s15  ;;  %p4343_p7 = pnand %p3954_p3, %p60_p5 }
  0x28   : > { %s5016_s1 = sld [smem:[#allocation16_spill]]  ;;  %s4354_s9 = scalar_lea.sflag [#allocation6], %s215_s14 }
  0x29   : > { %s219_s7 = scalar_lea.vmem [#allocation5], %s3909_s17  ;;  %p4026_p13 = pneg %p4343_p7 }
  0x2a   : > { %s226_s8 = sshll.u32 %s219_s7, 4  ;;  %s4352_s8 = int_to_ptr.vmem [resolvable:$true] %s226_s8 }
  0x2e   : > { %s4350_s6 = scalar_lea.hbm %s5016_s1, %s3910_s16  ;;  %s4029_s27 = scalar_lea.hbm %s5016_s1, 98304 }
  0x2f   : > { %s4024_s10 = scalar_lea.hbm %s4350_s6, 49152  ;;  %p4030_p2 = scmp.lt.s32.totalorder %s4350_s6, %s5016_s1 }
  0x30   : > { %p4025_p12 = scmp.ne.s32.totalorder %s4350_s6, %s4024_s10  ;;  %p4031_p3 = scmp.lt.s32.totalorder %s4029_s27, %s4024_s10 }
  0x32   : > { %p4027_p10 = pnand %p4026_p13, %p4025_p12  ;;  %p4032_p5 = por %p4031_p3, %p4030_p2 }
  0x34   : > { %p4028_p1 = pneg %p4027_p10 }
  0x36   : > { %p4033_p0 = pnand %p4032_p5, %p4028_p1 }
  0x38   : > { %4036 = shalt.err (!%p4033_p0)
}
  0x39   : > { %s4037_s14 = scalar_lea.vmem %s4352_s8, 49152  ;;  %s4207_s17 = smov [#allocation5]  }
  0x3a   : > { %p4038_p6 = scmp.ne.s32.totalorder %s4352_s8, %s4037_s14  ;;  %s4042_s7 = sshll.u32 %s4207_s17, 4  ;;  %s4043_s7 = int_to_ptr.vmem [resolvable:$false] %s4042_s7 }
  0x3b   : > { %s4044_s11 = scalar_lea.vmem %s4043_s7, 98304  ;;  %p4045_p9 = scmp.lt.s32.totalorder %s4352_s8, %s4043_s7 }
  0x3c   : > { %p4040_p12 = pnand %p4038_p6, %p4026_p13  ;;  %p4046_p4 = scmp.lt.s32.totalorder %s4044_s11, %s4037_s14 }
  0x3e   : > { %p4041_p10 = pneg %p4040_p12  ;;  %p4047_p8 = por %p4046_p4, %p4045_p9 }
  0x40   : > { %p4048_p2 = pnand %p4047_p8, %p4041_p10 }
  0x42   : > { %4051 = shalt.err (!%p4048_p2)
}
  0x43   : > { %s4208_s15 = smov 512   ;;  %s4209_s10 = smov 32  }
  0x44   : > { %3943 = dma.hbm_to_vmem [thread:$0]  (!%p4343_p7), %s4350_s6, 49152, %s4352_s8, %s4354_s9, %s4208_s15, %s4208_s15, %s4209_s10  }
  0x45   : > { %s4210_s16 = smov [#allocation2]   ;;  %s4211_s28 = smov [#allocation10]  }
  0x46   : > { %s182_s27 = sshll.u32 %s4210_s16, 4  ;;  %s204_s17 = sshll.u32 %s4211_s28, 4  ;;  %s183_s27 = int_to_ptr.vmem [resolvable:$true] %s182_s27  ;;  %s205_s17 = int_to_ptr.vmem [resolvable:$true] %s204_s17 }
  0x47   : > { %s4063_s1 = scalar_lea.vmem %s183_s27, 768  ;;  %p5017_p4 = pneg %p4296_p11 }
  0x48   : > { %p4064_p6 = scmp.ne.s32.totalorder %s183_s27, %s4063_s1  ;;  %p4071_p9 = scmp.lt.s32.totalorder %s183_s27, %s183_s27 }
  0x49   : > { %p4072_p1 = scmp.lt.s32.totalorder %s4063_s1, %s4063_s1 }
  0x4a   : > { %p4066_p8 = pnand %p4064_p6, %p5017_p4 }
  0x4b   : > { %p4073_p3 = por %p4072_p1, %p4071_p9 }
  0x4c   : > { %p4067_p0 = pneg %p4066_p8 }
  0x4e   : > { %p4074_p5 = pnand %p4073_p3, %p4067_p0 }
  0x50   : > { %4077 = shalt.err (!%p4074_p5)
}
  0x51   : > { %3933 = dma.hbm_to_vmem [thread:$0]  (!%p4296_p11), %s4995_s0, 768, %s183_s27, [#allocation3]  }
  0x52   : > { %s5018_s8 = sand.u32 1, %s4200_s20   ;;  %s4089_s11 = scalar_lea.vmem %s205_s17, 128 }
  0x53   : > { %s3501_s7 = sshll.u32 %s5018_s8, 3  ;;  %p4090_p12 = scmp.ne.s32.totalorder %s205_s17, %s4089_s11 }
  0x54   : > { %p5019_p10 = pmov %p5017_p4  ;;  %p4097_p4 = scmp.lt.s32.totalorder %s205_s17, %s205_s17 }
  0x55   : > { %p4098_p8 = scmp.lt.s32.totalorder %s4089_s11, %s4089_s11 }
  0x56   : > { %p4092_p2 = pnand %p4090_p12, %p5019_p10 }
  0x57   : > { %p4099_p0 = por %p4098_p8, %p4097_p4 }
  0x58   : > { %p4093_p6 = pneg %p4092_p2 }
  0x5a   : > { %p4100_p9 = pnand %p4099_p0, %p4093_p6 }
  0x5c   : > { %4103 = shalt.err (!%p4100_p9)
}
  0x5d   : > { %3939 = dma.hbm_to_vmem [thread:$0]  (!%p4296_p11), %s4999_s4, 128, %s205_s17, [#allocation9]  }
  0x5e   : > { %s3903_s10 = sshll.u32 %s4204_s21, 7  ;;  %s240_s14 = scalar_lea.vmem [#allocation7], %s3501_s7 }
  0x5f   : > { %s246_s28 = scalar_lea.hbm %s4997_s2, %s3903_s10  ;;  %s248_s6 = sshll.u32 %s240_s14, 4  ;;  %s249_s6 = int_to_ptr.vmem [resolvable:$true] %s248_s6 }
  0x60   : > { %s4104_s8 = scalar_lea.hbm %s246_s28, 128  ;;  %s4109_s1 = scalar_lea.hbm %s4997_s2, 256 }
  0x61   : > { %p4105_p1 = scmp.ne.s32.totalorder %s246_s28, %s4104_s8  ;;  %p4110_p11 = scmp.lt.s32.totalorder %s246_s28, %s4997_s2 }
  0x62   : > { %p4111_p12 = scmp.lt.s32.totalorder %s4109_s1, %s4104_s8 }
  0x63   : > { %p4107_p3 = pnand %p4105_p1, %p4026_p13 }
  0x64   : > { %p4112_p10 = por %p4111_p12, %p4110_p11 }
  0x65   : > { %p4108_p5 = pneg %p4107_p3 }
  0x67   : > { %p4113_p2 = pnand %p4112_p10, %p4108_p5 }
  0x69   : > { %4116 = shalt.err (!%p4113_p2)
}
  0x6a   : > { %s4117_s7 = scalar_lea.vmem %s249_s6, 128  ;;  %s4212_s10 = smov [#allocation7]  }
  0x6b   : > { %p4118_p6 = scmp.ne.s32.totalorder %s249_s6, %s4117_s7  ;;  %s4122_s16 = sshll.u32 %s4212_s10, 4  ;;  %s4123_s16 = int_to_ptr.vmem [resolvable:$false] %s4122_s16 }
  0x6c   : > { %s4124_s27 = scalar_lea.vmem %s4123_s16, 256  ;;  %p4125_p0 = scmp.lt.s32.totalorder %s249_s6, %s4123_s16 }
  0x6d   : > { %p4120_p4 = pnand %p4118_p6, %p4026_p13  ;;  %p4126_p9 = scmp.lt.s32.totalorder %s4124_s27, %s4117_s7 }
  0x6f   : > { %p4121_p8 = pneg %p4120_p4  ;;  %p4127_p1 = por %p4126_p9, %p4125_p0 }
  0x71   : > { %p4128_p3 = pnand %p4127_p1, %p4121_p8 }
  0x73   : > { %4131 = shalt.err (!%p4128_p3)
}
  0x74   : > { %3946 = dma.hbm_to_vmem [thread:$0]  (!%p4343_p7), %s246_s28, 128, %s249_s6, %s4354_s9  }
  0x75   : > { %p5020_p5 = scmp.ne.s32.totalorder %s5010_s26, 0 }
  0x76   : > { %p5021_p11 = scmp.eq.s32.totalorder (!%p5020_p5), %s4265_s22, 0 }
  0x77   : > { %257 = sbr.rel (%p5020_p5) target bundleno = 1061 (0x425), region = 40 }
  0x7c   : > { %4175 = dma.done.wait (%p5021_p11), [#allocation3], 768   ;;  %p5022_p13 = pmov %p5021_p11 }
  0x7d   : > { %s263_s14 = sand.u32 1, %s4265_s22   ;;  %s4426_s8 = sand.u32 1, %s4196_s19  }
  0x7e   : > { %4177 = vsyncadd (%p5022_p13), [#allocation3], 4294966528  ;;  %s3911_s30 = smul.u32 3072, %s4426_s8  ;;  %s264_s23 = scalar_lea.sflag [#allocation6], %s263_s14 }
  0x7f   : > { %p5023_p7 = scmp.ne.s32.totalorder %s5008_s24, 0 }
  0x80   : > { %s4429_s11 = scalar_lea.vmem [#allocation5], %s3911_s30 }
  0x81   : > { %4179 = dma.done.wait (%p5023_p7), %s264_s23, 49280  }
  0x82   : > { %4181 = vsyncadd (%p5023_p7), %s264_s23, 4294918016  ;;  %s3506_s26 = sshll.u32 %s4426_s8, 3  ;;  %p5024_p12 = pmov %p5021_p11 }
  0x83   : > { %s4436_s9 = scalar_lea.vmem [#allocation7], %s3506_s26 }
  0x84   : > { %4183 = dma.done.wait (%p5024_p12), [#allocation9], 256   ;;  %p5025_p10 = pmov %p5021_p11 }
  0x85   : > { %v385_v0 = vld [vmem:[%s4429_s11 + $0x1c0] sm:$0xff]  ;;  %v318_v53 = vld [vmem:[#allocation2 + $0x8] sm:$0xff]  ;;  %v320_v54 = vld [vmem:[#allocation2 + $0x18] sm:$0xff]  ;;  %s3509_s24 = sshll.u32 %s4426_s8, 5  ;;  %s3908_s28 = sshll.u32 %s4265_s22, 9 }
  0x86   : > { %4185 = vsyncadd (%p5025_p10), [#allocation9], 4294967040  ;;  %v389_v1 = vld [vmem:[%s4429_s11 + $0x1e0] sm:$0xff]  ;;  %v4472_v58 = vpack.c.bf16 %v318_v53, %v318_v53  ;;  %v4474_v59 = vpack.c.bf16 %v320_v54, %v320_v54  ;;  %s315_s6 = scalar_lea.vmem [#allocation11], %s3509_s24  ;;  %s4952_s7 = scalar_lea.hbm %s5000_s5, %s3908_s28 }
  0x87   : > { %v513_v2 = vld [vmem:[%s4429_s11 + $0x5c0] sm:$0xff]  ;;  %v3567_v3 = vcombine.high %v385_v0, %v389_v1  ;;  %v3566_v5 = vcombine.low %v385_v0, %v389_v1  ;;  %s3373_s1 = sshll.u32 %s315_s6, 4  ;;  %s3359_s22 = scalar_lea.sflag [#allocation4], %s4426_s8  ;;  %s4954_s1 = int_to_ptr.vmem [resolvable:$true] %s3373_s1 }
  0x88   : > { %v517_v4 = vld [vmem:[%s4429_s11 + $0x5e0] sm:$0xff]  ;;  %2707 = vmatprep.mubr.bf16.mxu0 %v4472_v58  ;;  %2748 = vmatprep.mubr.bf16.mxu1 %v4474_v59  ;;  %s4132_s10 = scalar_lea.vmem %s4954_s1, 512  ;;  %p5026_p6 = scmp.ne.s32.totalorder %s5014_s13, 0 }
  0x89   : > { %v377_v6 = vld [vmem:[%s4429_s11 + $0x180] sm:$0xff]  ;;  %v3695_v8 = vcombine.high %v513_v2, %v517_v4  ;;  %v3694_v9 = vcombine.low %v513_v2, %v517_v4  ;;  %2675 = vmatprep.subr.bf16.mxu0 %v3567_v3  ;;  %p4133_p2 = scmp.ne.s32.totalorder %s4954_s1, %s4132_s10  ;;  %s4213_s16 = smov [#allocation11]  }
  0x8a   : > { %v381_v7 = vld [vmem:[%s4429_s11 + $0x1a0] sm:$0xff]  ;;  %2676 = vmatpush1.bf16.msra.mxu0 %v3566_v5  ;;  %s4136_s27 = sshll.u32 %s4213_s16, 4  ;;  %s4137_s27 = int_to_ptr.vmem [resolvable:$false] %s4136_s27 }
  0x8b   : > { %v3559_v10 = vcombine.high %v377_v6, %v381_v7  ;;  %v505_v11 = vld [vmem:[%s4429_s11 + $0x580] sm:$0xff]  ;;  %2716 = vmatprep.subr.bf16.mxu1 %v3695_v8  ;;  %v3558_v18 = vcombine.low %v377_v6, %v381_v7  ;;  %p4134_p4 = pnand %p4133_p2, %p5026_p6  ;;  %s4138_s14 = scalar_lea.vmem %s4137_s27, 1024 }
  0x8c   : > { %v509_v12 = vld [vmem:[%s4429_s11 + $0x5a0] sm:$0xff]  ;;  %2717 = vmatpush1.bf16.msra.mxu1 %v3694_v9  ;;  %p4139_p0 = scmp.lt.s32.totalorder %s4954_s1, %s4137_s27  ;;  %p4140_p9 = scmp.lt.s32.totalorder %s4138_s14, %s4132_s10 }
  0x8d   : > { %v369_v13 = vld [vmem:[%s4429_s11 + $0x140] sm:$0xff]  ;;  %v3687_v14 = vcombine.high %v505_v11, %v509_v12  ;;  %2677 = vmatprep.subr.bf16.mxu0 %v3559_v10  ;;  %v3686_v19 = vcombine.low %v505_v11, %v509_v12  ;;  %p4135_p8 = pneg %p4134_p4 }
  0x8e   : > { %v373_v15 = vld [vmem:[%s4429_s11 + $0x160] sm:$0xff]  ;;  %2678 = vmatpush1.bf16.msra.mxu0 %v3558_v18  ;;  %p4141_p1 = por %p4140_p9, %p4139_p0 }
  0x8f   : > { %v497_v16 = vld [vmem:[%s4429_s11 + $0x540] sm:$0xff]  ;;  %v3551_v20 = vcombine.high %v369_v13, %v373_v15  ;;  %2718 = vmatprep.subr.bf16.mxu1 %v3687_v14  ;;  %v3550_v26 = vcombine.low %v369_v13, %v373_v15 }
  0x90   : > { %v501_v17 = vld [vmem:[%s4429_s11 + $0x560] sm:$0xff]  ;;  %2719 = vmatpush1.bf16.msra.mxu1 %v3686_v19  ;;  %p4142_p3 = pnand %p4141_p1, %p4135_p8 }
  0x91   : > { %v3679_v21 = vcombine.high %v497_v16, %v501_v17  ;;  %v361_v22 = vld [vmem:[%s4429_s11 + $0x100] sm:$0xff]  ;;  %2679 = vmatprep.subr.bf16.mxu0 %v3551_v20  ;;  %v3678_v27 = vcombine.low %v497_v16, %v501_v17 }
  0x92   : > { %v365_v23 = vld [vmem:[%s4429_s11 + $0x120] sm:$0xff]  ;;  %2680 = vmatpush1.bf16.msra.mxu0 %v3550_v26 }
  0x93   : > { %v489_v24 = vld [vmem:[%s4429_s11 + $0x500] sm:$0xff]  ;;  %v3543_v28 = vcombine.high %v361_v22, %v365_v23  ;;  %2720 = vmatprep.subr.bf16.mxu1 %v3679_v21  ;;  %v3542_v34 = vcombine.low %v361_v22, %v365_v23 }
  0x94   : > { %v493_v25 = vld [vmem:[%s4429_s11 + $0x520] sm:$0xff]  ;;  %2721 = vmatpush1.bf16.msra.mxu1 %v3678_v27 }
  0x95   : > { %v3671_v29 = vcombine.high %v489_v24, %v493_v25  ;;  %v353_v30 = vld [vmem:[%s4429_s11 + $0xc0] sm:$0xff]  ;;  %2681 = vmatprep.subr.bf16.mxu0 %v3543_v28  ;;  %v3670_v35 = vcombine.low %v489_v24, %v493_v25 }
  0x96   : > { %v357_v31 = vld [vmem:[%s4429_s11 + $0xe0] sm:$0xff]  ;;  %2682 = vmatpush1.bf16.msra.mxu0 %v3542_v34 }
  0x97   : > { %v481_v32 = vld [vmem:[%s4429_s11 + $0x4c0] sm:$0xff]  ;;  %v3535_v36 = vcombine.high %v353_v30, %v357_v31  ;;  %2722 = vmatprep.subr.bf16.mxu1 %v3671_v29  ;;  %v3534_v42 = vcombine.low %v353_v30, %v357_v31 }
  0x98   : > { %v485_v33 = vld [vmem:[%s4429_s11 + $0x4e0] sm:$0xff]  ;;  %2723 = vmatpush1.bf16.msra.mxu1 %v3670_v35 }
  0x99   : > { %v3663_v37 = vcombine.high %v481_v32, %v485_v33  ;;  %v345_v38 = vld [vmem:[%s4429_s11 + $0x80] sm:$0xff]  ;;  %2683 = vmatprep.subr.bf16.mxu0 %v3535_v36  ;;  %v3662_v43 = vcombine.low %v481_v32, %v485_v33 }
  0x9a   : > { %v349_v39 = vld [vmem:[%s4429_s11 + $0xa0] sm:$0xff]  ;;  %2684 = vmatpush1.bf16.msra.mxu0 %v3534_v42 }
  0x9b   : > { %v473_v40 = vld [vmem:[%s4429_s11 + $0x480] sm:$0xff]  ;;  %v3527_v44 = vcombine.high %v345_v38, %v349_v39  ;;  %2724 = vmatprep.subr.bf16.mxu1 %v3663_v37  ;;  %v3526_v50 = vcombine.low %v345_v38, %v349_v39 }
  0x9c   : > { %v477_v41 = vld [vmem:[%s4429_s11 + $0x4a0] sm:$0xff]  ;;  %2725 = vmatpush1.bf16.msra.mxu1 %v3662_v43 }
  0x9d   : > { %v3655_v45 = vcombine.high %v473_v40, %v477_v41  ;;  %v337_v46 = vld [vmem:[%s4429_s11 + $0x40] sm:$0xff]  ;;  %2685 = vmatprep.subr.bf16.mxu0 %v3527_v44  ;;  %v3654_v51 = vcombine.low %v473_v40, %v477_v41 }
  0x9e   : > { %v341_v47 = vld [vmem:[%s4429_s11 + $0x60] sm:$0xff]  ;;  %2686 = vmatpush1.bf16.msra.mxu0 %v3526_v50 }
  0x9f   : > { %v465_v48 = vld [vmem:[%s4429_s11 + $0x440] sm:$0xff]  ;;  %v3519_v52 = vcombine.high %v337_v46, %v341_v47  ;;  %2726 = vmatprep.subr.bf16.mxu1 %v3655_v45  ;;  %v3518_v62 = vcombine.low %v337_v46, %v341_v47 }
  0xa0   : > { %v469_v49 = vld [vmem:[%s4429_s11 + $0x460] sm:$0xff]  ;;  %2727 = vmatpush1.bf16.msra.mxu1 %v3654_v51 }
  0xa1   : > { %v3647_v55 = vcombine.high %v465_v48, %v469_v49  ;;  %v329_v56 = vld [vmem:[%s4429_s11] sm:$0xff]  ;;  %2687 = vmatprep.subr.bf16.mxu0 %v3519_v52  ;;  %v3646_v63 = vcombine.low %v465_v48, %v469_v49 }
  0xa2   : > { %v333_v57 = vld [vmem:[%s4429_s11 + $0x20] sm:$0xff]  ;;  %2688 = vmatpush1.bf16.msra.mxu0 %v3518_v62 }
  0xa3   : > { %v457_v60 = vld [vmem:[%s4429_s11 + $0x400] sm:$0xff]  ;;  %v3511_v0 = vcombine.high %v329_v56, %v333_v57  ;;  %2728 = vmatprep.subr.bf16.mxu1 %v3647_v55  ;;  %v3510_v6 = vcombine.low %v329_v56, %v333_v57 }
  0xa4   : > { %v461_v61 = vld [vmem:[%s4429_s11 + $0x420] sm:$0xff]  ;;  %2729 = vmatpush1.bf16.msra.mxu1 %v3646_v63 }
  0xa5   : > { %v3639_v1 = vcombine.high %v457_v60, %v461_v61  ;;  %v449_v2 = vld [vmem:[%s4429_s11 + $0x3c0] sm:$0xff]  ;;  %2689 = vmatprep.subr.bf16.mxu0 %v3511_v0  ;;  %v3638_v7 = vcombine.low %v457_v60, %v461_v61 }
  0xa6   : > { %v453_v3 = vld [vmem:[%s4429_s11 + $0x3e0] sm:$0xff]  ;;  %2690 = vmatpush1.bf16.msra.mxu0 %v3510_v6  ;;  %v386_v6 = vld [vmem:[%s4429_s11 + $0x1c8] sm:$0xff] }
  0xa7   : > { %v577_v4 = vld [vmem:[%s4429_s11 + $0x7c0] sm:$0xff]  ;;  %v3631_v8 = vcombine.high %v449_v2, %v453_v3  ;;  %2730 = vmatprep.subr.bf16.mxu1 %v3639_v1  ;;  %v3630_v14 = vcombine.low %v449_v2, %v453_v3 }
  0xa8   : > { %v581_v5 = vld [vmem:[%s4429_s11 + $0x7e0] sm:$0xff]  ;;  %2731 = vmatpush1.bf16.msra.mxu1 %v3638_v7  ;;  %v390_v7 = vld [vmem:[%s4429_s11 + $0x1e8] sm:$0xff] }
  0xa9   : > { %v3759_v9 = vcombine.high %v577_v4, %v581_v5  ;;  %v441_v10 = vld [vmem:[%s4429_s11 + $0x380] sm:$0xff]  ;;  %2691 = vmatprep.subr.bf16.mxu0 %v3631_v8  ;;  %v3758_v15 = vcombine.low %v577_v4, %v581_v5 }
  0xaa   : > { %v445_v11 = vld [vmem:[%s4429_s11 + $0x3a0] sm:$0xff]  ;;  %2692 = vmatpush2.bf16.msra.mxu0 %v3630_v14 }
  0xab   : > { %v569_v12 = vld [vmem:[%s4429_s11 + $0x780] sm:$0xff]  ;;  %v3623_v16 = vcombine.high %v441_v10, %v445_v11  ;;  %2732 = vmatprep.subr.bf16.mxu1 %v3759_v9  ;;  %v3622_v22 = vcombine.low %v441_v10, %v445_v11  ;;  %v317_v9 = vld [vmem:[#allocation2] sm:$0xff] }
  0xac   : > { %v573_v13 = vld [vmem:[%s4429_s11 + $0x7a0] sm:$0xff]  ;;  %2733 = vmatpush2.bf16.msra.mxu1 %v3758_v15 }
  0xad   : > { %v3751_v17 = vcombine.high %v569_v12, %v573_v13  ;;  %v433_v18 = vld [vmem:[%s4429_s11 + $0x340] sm:$0xff]  ;;  %2693 = vmatprep.subr.bf16.mxu0 %v3623_v16  ;;  %v3750_v23 = vcombine.low %v569_v12, %v573_v13  ;;  %v3569_v13 = vcombine.high %v386_v6, %v390_v7  ;;  %v4518_v16 = vpack.c.bf16 %v317_v9, %v317_v9 }
  0xae   : > { %v437_v19 = vld [vmem:[%s4429_s11 + $0x360] sm:$0xff]  ;;  %2694 = vmatpush2.bf16.msra.mxu0 %v3622_v22  ;;  %v3568_v22 = vcombine.low %v386_v6, %v390_v7  ;;  %v330_v6 = vld [vmem:[%s4429_s11 + $0x8] sm:$0xff] }
  0xaf   : > { %v561_v20 = vld [vmem:[%s4429_s11 + $0x740] sm:$0xff]  ;;  %v3615_v24 = vcombine.high %v433_v18, %v437_v19  ;;  %2734 = vmatprep.subr.bf16.mxu1 %v3751_v17  ;;  %v3614_v30 = vcombine.low %v433_v18, %v437_v19  ;;  %v378_v17 = vld [vmem:[%s4429_s11 + $0x188] sm:$0xff]  ;;  %v322_v19 = vld [vmem:[#allocation2 + $0x28] sm:$0xff] }
  0xb0   : > { %v565_v21 = vld [vmem:[%s4429_s11 + $0x760] sm:$0xff]  ;;  %2735 = vmatpush2.bf16.msra.mxu1 %v3750_v23  ;;  %v382_v18 = vld [vmem:[%s4429_s11 + $0x1a8] sm:$0xff] }
  0xb1   : > { %v3743_v25 = vcombine.high %v561_v20, %v565_v21  ;;  %v425_v26 = vld [vmem:[%s4429_s11 + $0x300] sm:$0xff]  ;;  %2695 = vmatprep.subr.bf16.mxu0 %v3615_v24  ;;  %v3742_v31 = vcombine.low %v561_v20, %v565_v21  ;;  %v3561_v24 = vcombine.high %v378_v17, %v382_v18  ;;  %v334_v7 = vld [vmem:[%s4429_s11 + $0x28] sm:$0xff] }
  0xb2   : > { %v429_v27 = vld [vmem:[%s4429_s11 + $0x320] sm:$0xff]  ;;  %2696 = vmatpush2.bf16.msra.mxu0 %v3614_v30 }
  0xb3   : > { %v553_v28 = vld [vmem:[%s4429_s11 + $0x700] sm:$0xff]  ;;  %v3607_v32 = vcombine.high %v425_v26, %v429_v27  ;;  %2736 = vmatprep.subr.bf16.mxu1 %v3743_v25  ;;  %v3606_v38 = vcombine.low %v425_v26, %v429_v27  ;;  %v4526_v27 = vpack.c.bf16 %v322_v19, %v322_v19 }
  0xb4   : > { %v557_v29 = vld [vmem:[%s4429_s11 + $0x720] sm:$0xff]  ;;  %2737 = vmatpush2.bf16.msra.mxu1 %v3742_v31  ;;  %v3560_v31 = vcombine.low %v378_v17, %v382_v18  ;;  %v3512_v18 = vcombine.low %v330_v6, %v334_v7 }
  0xb5   : > { %v3735_v33 = vcombine.high %v553_v28, %v557_v29  ;;  %v417_v34 = vld [vmem:[%s4429_s11 + $0x2c0] sm:$0xff]  ;;  %2697 = vmatprep.subr.bf16.mxu0 %v3607_v32  ;;  %v3734_v39 = vcombine.low %v553_v28, %v557_v29  ;;  %v370_v28 = vld [vmem:[%s4429_s11 + $0x148] sm:$0xff] }
  0xb6   : > { %v421_v35 = vld [vmem:[%s4429_s11 + $0x2e0] sm:$0xff]  ;;  %2698 = vmatpush2.bf16.msra.mxu0 %v3606_v38  ;;  %v374_v29 = vld [vmem:[%s4429_s11 + $0x168] sm:$0xff] }
  0xb7   : > { %v545_v36 = vld [vmem:[%s4429_s11 + $0x6c0] sm:$0xff]  ;;  %v3599_v40 = vcombine.high %v417_v34, %v421_v35  ;;  %2738 = vmatprep.subr.bf16.mxu1 %v3735_v33  ;;  %v3598_v46 = vcombine.low %v417_v34, %v421_v35  ;;  %v3553_v33 = vcombine.high %v370_v28, %v374_v29 }
  0xb8   : > { %v549_v37 = vld [vmem:[%s4429_s11 + $0x6e0] sm:$0xff]  ;;  %2739 = vmatpush2.bf16.msra.mxu1 %v3734_v39  ;;  %v3552_v39 = vcombine.low %v370_v28, %v374_v29 }
  0xb9   : > { %v3727_v41 = vcombine.high %v545_v36, %v549_v37  ;;  %v409_v42 = vld [vmem:[%s4429_s11 + $0x280] sm:$0xff]  ;;  %2699 = vmatprep.subr.bf16.mxu0 %v3599_v40  ;;  %v3726_v47 = vcombine.low %v545_v36, %v549_v37  ;;  %v362_v36 = vld [vmem:[%s4429_s11 + $0x108] sm:$0xff] }
  0xba   : > { %v413_v43 = vld [vmem:[%s4429_s11 + $0x2a0] sm:$0xff]  ;;  %2700 = vmatpush2.bf16.msra.mxu0 %v3598_v46  ;;  %v366_v37 = vld [vmem:[%s4429_s11 + $0x128] sm:$0xff] }
  0xbb   : > { %v537_v44 = vld [vmem:[%s4429_s11 + $0x680] sm:$0xff]  ;;  %v3591_v48 = vcombine.high %v409_v42, %v413_v43  ;;  %2740 = vmatprep.subr.bf16.mxu1 %v3727_v41  ;;  %v3590_v54 = vcombine.low %v409_v42, %v413_v43  ;;  %v3545_v41 = vcombine.high %v362_v36, %v366_v37 }
  0xbc   : > { %v541_v45 = vld [vmem:[%s4429_s11 + $0x6a0] sm:$0xff]  ;;  %2741 = vmatpush2.bf16.msra.mxu1 %v3726_v47  ;;  %v3544_v47 = vcombine.low %v362_v36, %v366_v37 }
  0xbd   : > { %v3719_v49 = vcombine.high %v537_v44, %v541_v45  ;;  %v401_v50 = vld [vmem:[%s4429_s11 + $0x240] sm:$0xff]  ;;  %2701 = vmatprep.subr.bf16.mxu0 %v3591_v48  ;;  %v3718_v55 = vcombine.low %v537_v44, %v541_v45  ;;  %v354_v44 = vld [vmem:[%s4429_s11 + $0xc8] sm:$0xff] }
  0xbe   : > { %v405_v51 = vld [vmem:[%s4429_s11 + $0x260] sm:$0xff]  ;;  %2702 = vmatpush2.bf16.msra.mxu0 %v3590_v54  ;;  %v358_v45 = vld [vmem:[%s4429_s11 + $0xe8] sm:$0xff] }
  0xbf   : > { %v529_v52 = vld [vmem:[%s4429_s11 + $0x640] sm:$0xff]  ;;  %v3583_v56 = vcombine.high %v401_v50, %v405_v51  ;;  %2742 = vmatprep.subr.bf16.mxu1 %v3719_v49  ;;  %v3582_v0 = vcombine.low %v401_v50, %v405_v51  ;;  %v3537_v49 = vcombine.high %v354_v44, %v358_v45 }
  0xc0   : > { %v533_v53 = vld [vmem:[%s4429_s11 + $0x660] sm:$0xff]  ;;  %2743 = vmatpush2.bf16.msra.mxu1 %v3718_v55  ;;  %v3536_v55 = vcombine.low %v354_v44, %v358_v45 }
  0xc1   : > { %v3711_v57 = vcombine.high %v529_v52, %v533_v53  ;;  %v393_v60 = vld [vmem:[%s4429_s11 + $0x200] sm:$0xff]  ;;  %2703 = vmatprep.subr.bf16.mxu0 %v3583_v56  ;;  %v3710_v1 = vcombine.low %v529_v52, %v533_v53  ;;  %v346_v52 = vld [vmem:[%s4429_s11 + $0x88] sm:$0xff] }
  0xc2   : > { %v397_v61 = vld [vmem:[%s4429_s11 + $0x220] sm:$0xff]  ;;  %2704 = vmatpush2.bf16.msra.mxu0 %v3582_v0  ;;  %v350_v53 = vld [vmem:[%s4429_s11 + $0xa8] sm:$0xff] }
  0xc3   : > { %v521_v62 = vld [vmem:[%s4429_s11 + $0x600] sm:$0xff]  ;;  %v3575_v2 = vcombine.high %v393_v60, %v397_v61  ;;  %2744 = vmatprep.subr.bf16.mxu1 %v3711_v57  ;;  %v3574_v8 = vcombine.low %v393_v60, %v397_v61  ;;  %v3529_v57 = vcombine.high %v346_v52, %v350_v53 }
  0xc4   : > { %v525_v63 = vld [vmem:[%s4429_s11 + $0x620] sm:$0xff]  ;;  %2745 = vmatpush2.bf16.msra.mxu1 %v3710_v1  ;;  %v3528_v1 = vcombine.low %v346_v52, %v350_v53 }
  0xc5   : > { %v3703_v3 = vcombine.high %v521_v62, %v525_v63  ;;  %v641_v4 = vld [vmem:[%s4429_s11 + $0x9c0] sm:$0xff]  ;;  %2705 = vmatprep.subr.bf16.mxu0 %v3575_v2  ;;  %v3702_v10 = vcombine.low %v521_v62, %v525_v63  ;;  %v338_v62 = vld [vmem:[%s4429_s11 + $0x48] sm:$0xff] }
  0xc6   : > { %v645_v5 = vld [vmem:[%s4429_s11 + $0x9e0] sm:$0xff]  ;;  %2706 = vmatpush2.bf16.msra.mxu0 %v3574_v8  ;;  %v342_v63 = vld [vmem:[%s4429_s11 + $0x68] sm:$0xff] }
  0xc7   : > { %v319_v11 = vld [vmem:[#allocation2 + $0x10] sm:$0xff]  ;;  %v3823_v12 = vcombine.high %v641_v4, %v645_v5  ;;  %2746 = vmatprep.subr.bf16.mxu1 %v3703_v3  ;;  %v3822_v21 = vcombine.low %v641_v4, %v645_v5  ;;  %v3521_v3 = vcombine.high %v338_v62, %v342_v63  ;;  %v3520_v9 = vcombine.low %v338_v62, %v342_v63 }
  0xc8   : > { %v633_v14 = vld [vmem:[%s4429_s11 + $0x980] sm:$0xff]  ;;  %v4522_v20 = vpack.c.bf16 %v319_v11, %v319_v11  ;;  %2747 = vmatpush2.bf16.msra.mxu1 %v3702_v10  ;;  %v3513_v11 = vcombine.high %v330_v6, %v334_v7 }
  0xc9   : > { %v637_v15 = vld [vmem:[%s4429_s11 + $0x9a0] sm:$0xff]  ;;  %2757 = vmatprep.subr.bf16.mxu0 %v3823_v12  ;;  %2798 = vmatprep.subr.bf16.mxu1 %v3569_v13 }
  0xca   : > { %v3815_v23 = vcombine.high %v633_v14, %v637_v15  ;;  %v625_v25 = vld [vmem:[%s4429_s11 + $0x940] sm:$0xff]  ;;  %2708 = vmatmul.mubr.bf16.vlgmr.msra.gmra.mxu0 %v4518_v16  ;;  %v3814_v30 = vcombine.low %v633_v14, %v637_v15  ;;  %v450_v14 = vld [vmem:[%s4429_s11 + $0x3c8] sm:$0xff] }
  0xcb   : > { %v629_v26 = vld [vmem:[%s4429_s11 + $0x960] sm:$0xff]  ;;  %2749 = vmatmul.mubr.bf16.vlgmr.msra.gmra.mxu1 %v4522_v20  ;;  %2758 = vmatpush1.bf16.msra.mxu0 %v3822_v21  ;;  %v454_v15 = vld [vmem:[%s4429_s11 + $0x3e8] sm:$0xff] }
  0xcc   : > { %2799 = vmatpush1.bf16.msra.mxu1 %v3568_v22  ;;  %2759 = vmatprep.subr.bf16.mxu0 %v3815_v23  ;;  %v3807_v32 = vcombine.high %v625_v25, %v629_v26  ;;  %v617_v34 = vld [vmem:[%s4429_s11 + $0x900] sm:$0xff]  ;;  %v3806_v38 = vcombine.low %v625_v25, %v629_v26  ;;  %v3633_v21 = vcombine.high %v450_v14, %v454_v15  ;;  %v446_v25 = vld [vmem:[%s4429_s11 + $0x3a8] sm:$0xff] }
  0xcd   : > { %2800 = vmatprep.subr.bf16.mxu1 %v3561_v24  ;;  %v621_v35 = vld [vmem:[%s4429_s11 + $0x920] sm:$0xff]  ;;  %2789 = vmatprep.mubr.bf16.mxu0 %v4526_v27  ;;  %v442_v24 = vld [vmem:[%s4429_s11 + $0x388] sm:$0xff]  ;;  %v3632_v28 = vcombine.low %v450_v14, %v454_v15 }
  0xce   : > { %2830 = vmatprep.mubr.bf16.mxu1 %v4472_v58  ;;  %v3799_v40 = vcombine.high %v617_v34, %v621_v35  ;;  %v609_v42 = vld [vmem:[%s4429_s11 + $0x8c0] sm:$0xff]  ;;  %v3798_v46 = vcombine.low %v617_v34, %v621_v35  ;;  %v438_v34 = vld [vmem:[%s4429_s11 + $0x368] sm:$0xff]  ;;  %v3624_v36 = vcombine.low %v442_v24, %v446_v25 }
  0xcf   : > { %2760 = vmatpush1.bf16.msra.mxu0 %v3814_v30  ;;  %v613_v43 = vld [vmem:[%s4429_s11 + $0x8e0] sm:$0xff]  ;;  %v3625_v30 = vcombine.high %v442_v24, %v446_v25  ;;  %v321_v24 = vld [vmem:[#allocation2 + $0x20] sm:$0xff] }
  0xd0   : > { %2801 = vmatpush1.bf16.msra.mxu1 %v3560_v31  ;;  %2761 = vmatprep.subr.bf16.mxu0 %v3807_v32  ;;  %v3791_v48 = vcombine.high %v609_v42, %v613_v43  ;;  %v601_v50 = vld [vmem:[%s4429_s11 + $0x880] sm:$0xff]  ;;  %v3790_v54 = vcombine.low %v609_v42, %v613_v43  ;;  %v430_v42 = vld [vmem:[%s4429_s11 + $0x328] sm:$0xff] }
  0xd1   : > { %2802 = vmatprep.subr.bf16.mxu1 %v3553_v33  ;;  %v605_v51 = vld [vmem:[%s4429_s11 + $0x8a0] sm:$0xff]  ;;  %v434_v33 = vld [vmem:[%s4429_s11 + $0x348] sm:$0xff] }
  0xd2   : > { %v3783_v56 = vcombine.high %v601_v50, %v605_v51  ;;  %v593_v60 = vld [vmem:[%s4429_s11 + $0x840] sm:$0xff]  ;;  %v3782_v0 = vcombine.low %v601_v50, %v605_v51  ;;  %v3616_v44 = vcombine.low %v434_v33, %v438_v34  ;;  %v422_v50 = vld [vmem:[%s4429_s11 + $0x2e8] sm:$0xff] }
  0xd3   : > { %2762 = vmatpush1.bf16.msra.mxu0 %v3806_v38  ;;  %v597_v61 = vld [vmem:[%s4429_s11 + $0x860] sm:$0xff]  ;;  %v3617_v38 = vcombine.high %v434_v33, %v438_v34  ;;  %v638_v33 = vld [vmem:[%s4429_s11 + $0x9a8] sm:$0xff] }
  0xd4   : > { %2803 = vmatpush1.bf16.msra.mxu1 %v3552_v39  ;;  %2763 = vmatprep.subr.bf16.mxu0 %v3799_v40  ;;  %v3775_v2 = vcombine.high %v593_v60, %v597_v61  ;;  %v585_v4 = vld [vmem:[%s4429_s11 + $0x800] sm:$0xff]  ;;  %v3774_v8 = vcombine.low %v593_v60, %v597_v61  ;;  %v414_v60 = vld [vmem:[%s4429_s11 + $0x2a8] sm:$0xff] }
  0xd5   : > { %2804 = vmatprep.subr.bf16.mxu1 %v3545_v41  ;;  %v589_v5 = vld [vmem:[%s4429_s11 + $0x820] sm:$0xff]  ;;  %v426_v41 = vld [vmem:[%s4429_s11 + $0x308] sm:$0xff] }
  0xd6   : > { %v3767_v10 = vcombine.high %v585_v4, %v589_v5  ;;  %v705_v12 = vld [vmem:[%s4429_s11 + $0xbc0] sm:$0xff]  ;;  %v3766_v17 = vcombine.low %v585_v4, %v589_v5  ;;  %v3608_v52 = vcombine.low %v426_v41, %v430_v42  ;;  %v406_v4 = vld [vmem:[%s4429_s11 + $0x268] sm:$0xff] }
  0xd7   : > { %2764 = vmatpush1.bf16.msra.mxu0 %v3798_v46  ;;  %v709_v13 = vld [vmem:[%s4429_s11 + $0xbe0] sm:$0xff]  ;;  %v3609_v46 = vcombine.high %v426_v41, %v430_v42  ;;  %v630_v41 = vld [vmem:[%s4429_s11 + $0x968] sm:$0xff] }
  0xd8   : > { %2805 = vmatpush1.bf16.msra.mxu1 %v3544_v47  ;;  %2765 = vmatprep.subr.bf16.mxu0 %v3791_v48  ;;  %v3887_v19 = vcombine.high %v705_v12, %v709_v13  ;;  %v697_v22 = vld [vmem:[%s4429_s11 + $0xb80] sm:$0xff]  ;;  %v3886_v26 = vcombine.low %v705_v12, %v709_v13  ;;  %v398_v12 = vld [vmem:[%s4429_s11 + $0x228] sm:$0xff] }
  0xd9   : > { %2806 = vmatprep.subr.bf16.mxu1 %v3537_v49  ;;  %v701_v23 = vld [vmem:[%s4429_s11 + $0xba0] sm:$0xff]  ;;  %v418_v49 = vld [vmem:[%s4429_s11 + $0x2c8] sm:$0xff] }
  0xda   : > { %v3879_v29 = vcombine.high %v697_v22, %v701_v23  ;;  %v689_v31 = vld [vmem:[%s4429_s11 + $0xb40] sm:$0xff]  ;;  %v3878_v35 = vcombine.low %v697_v22, %v701_v23  ;;  %v3600_v62 = vcombine.low %v418_v49, %v422_v50  ;;  %v646_v22 = vld [vmem:[%s4429_s11 + $0x9e8] sm:$0xff] }
  0xdb   : > { %2766 = vmatpush1.bf16.msra.mxu0 %v3790_v54  ;;  %v693_v32 = vld [vmem:[%s4429_s11 + $0xb60] sm:$0xff]  ;;  %v3601_v54 = vcombine.high %v418_v49, %v422_v50  ;;  %v622_v49 = vld [vmem:[%s4429_s11 + $0x928] sm:$0xff] }
  0xdc   : > { %2807 = vmatpush1.bf16.msra.mxu1 %v3536_v55  ;;  %2767 = vmatprep.subr.bf16.mxu0 %v3783_v56  ;;  %v3871_v37 = vcombine.high %v689_v31, %v693_v32  ;;  %v681_v39 = vld [vmem:[%s4429_s11 + $0xb00] sm:$0xff]  ;;  %v3870_v43 = vcombine.low %v689_v31, %v693_v32  ;;  %v4592_v31 = vpack.c.bf16 %v321_v24, %v321_v24  ;;  %v634_v32 = vld [vmem:[%s4429_s11 + $0x988] sm:$0xff] }
  0xdd   : > { %2808 = vmatprep.subr.bf16.mxu1 %v3529_v57  ;;  %v685_v40 = vld [vmem:[%s4429_s11 + $0xb20] sm:$0xff]  ;;  %v410_v57 = vld [vmem:[%s4429_s11 + $0x288] sm:$0xff] }
  0xde   : > { %v3863_v45 = vcombine.high %v681_v39, %v685_v40  ;;  %v673_v47 = vld [vmem:[%s4429_s11 + $0xac0] sm:$0xff]  ;;  %v3862_v51 = vcombine.low %v681_v39, %v685_v40  ;;  %v3592_v6 = vcombine.low %v410_v57, %v414_v60  ;;  %v502_v39 = vld [vmem:[%s4429_s11 + $0x568] sm:$0xff] }
  0xdf   : > { %2768 = vmatpush1.bf16.msra.mxu0 %v3782_v0  ;;  %v677_v48 = vld [vmem:[%s4429_s11 + $0xae0] sm:$0xff]  ;;  %v3593_v0 = vcombine.high %v410_v57, %v414_v60  ;;  %v626_v40 = vld [vmem:[%s4429_s11 + $0x948] sm:$0xff] }
  0xe0   : > { %2809 = vmatpush1.bf16.msra.mxu1 %v3528_v1  ;;  %2769 = vmatprep.subr.bf16.mxu0 %v3775_v2  ;;  %v3855_v53 = vcombine.high %v673_v47, %v677_v48  ;;  %v665_v55 = vld [vmem:[%s4429_s11 + $0xa80] sm:$0xff]  ;;  %v3854_v61 = vcombine.low %v673_v47, %v677_v48  ;;  %v494_v47 = vld [vmem:[%s4429_s11 + $0x528] sm:$0xff] }
  0xe1   : > { %2810 = vmatprep.subr.bf16.mxu1 %v3521_v3  ;;  %v669_v56 = vld [vmem:[%s4429_s11 + $0xaa0] sm:$0xff]  ;;  %v402_v3 = vld [vmem:[%s4429_s11 + $0x248] sm:$0xff] }
  0xe2   : > { %v3847_v63 = vcombine.high %v665_v55, %v669_v56  ;;  %v657_v1 = vld [vmem:[%s4429_s11 + $0xa40] sm:$0xff]  ;;  %v3846_v5 = vcombine.low %v665_v55, %v669_v56  ;;  %v3584_v14 = vcombine.low %v402_v3, %v406_v4  ;;  %v618_v48 = vld [vmem:[%s4429_s11 + $0x908] sm:$0xff] }
  0xe3   : > { %2770 = vmatpush1.bf16.msra.mxu0 %v3774_v8  ;;  %v661_v2 = vld [vmem:[%s4429_s11 + $0xa60] sm:$0xff]  ;;  %v3585_v8 = vcombine.high %v402_v3, %v406_v4  ;;  %v486_v55 = vld [vmem:[%s4429_s11 + $0x4e8] sm:$0xff] }
  0xe4   : > { %2811 = vmatpush1.bf16.msra.mxu1 %v3520_v9  ;;  %2771 = vmatprep.subr.bf16.mxu0 %v3767_v10  ;;  %v3839_v7 = vcombine.high %v657_v1, %v661_v2  ;;  %v649_v9 = vld [vmem:[%s4429_s11 + $0xa00] sm:$0xff]  ;;  %v3838_v13 = vcombine.low %v657_v1, %v661_v2  ;;  %v610_v56 = vld [vmem:[%s4429_s11 + $0x8c8] sm:$0xff] }
  0xe5   : > { %2812 = vmatprep.subr.bf16.mxu1 %v3513_v11  ;;  %v653_v10 = vld [vmem:[%s4429_s11 + $0xa20] sm:$0xff]  ;;  %v394_v11 = vld [vmem:[%s4429_s11 + $0x208] sm:$0xff] }
  0xe6   : > { %v3831_v15 = vcombine.high %v649_v9, %v653_v10  ;;  %v3830_v23 = vcombine.low %v649_v9, %v653_v10  ;;  %v3576_v25 = vcombine.low %v394_v11, %v398_v12  ;;  %v614_v57 = vld [vmem:[%s4429_s11 + $0x8e8] sm:$0xff] }
  0xe7   : > { %2772 = vmatpush1.bf16.msra.mxu0 %v3766_v17  ;;  %v3577_v17 = vcombine.high %v394_v11, %v398_v12  ;;  %v478_v1 = vld [vmem:[%s4429_s11 + $0x4a8] sm:$0xff] }
  0xe8   : > { %2813 = vmatpush1.bf16.msra.mxu1 %v3512_v18  ;;  %2773 = vmatprep.subr.bf16.mxu0 %v3887_v19  ;;  %v514_v18 = vld [vmem:[%s4429_s11 + $0x5c8] sm:$0xff] }
  0xe9   : > { %2814 = vmatprep.subr.bf16.mxu1 %v3633_v21  ;;  %v518_v19 = vld [vmem:[%s4429_s11 + $0x5e8] sm:$0xff] }
  0xea   : > { %v642_v21 = vld [vmem:[%s4429_s11 + $0x9c8] sm:$0xff]  ;;  %v3696_v34 = vcombine.low %v514_v18, %v518_v19 }
  0xeb   : > { %2774 = vmatpush2.bf16.msra.mxu0 %v3886_v26  ;;  %v3697_v26 = vcombine.high %v514_v18, %v518_v19  ;;  %v602_v2 = vld [vmem:[%s4429_s11 + $0x888] sm:$0xff] }
  0xec   : > { %2815 = vmatpush2.bf16.msra.mxu1 %v3632_v28  ;;  %2775 = vmatprep.subr.bf16.mxu0 %v3879_v29  ;;  %v3825_v28 = vcombine.high %v642_v21, %v646_v22  ;;  %v506_v29 = vld [vmem:[%s4429_s11 + $0x588] sm:$0xff] }
  0xed   : > { %2816 = vmatprep.subr.bf16.mxu1 %v3625_v30  ;;  %v510_v30 = vld [vmem:[%s4429_s11 + $0x5a8] sm:$0xff] }
  0xee   : > { %v3688_v42 = vcombine.low %v506_v29, %v510_v30  ;;  %v606_v3 = vld [vmem:[%s4429_s11 + $0x8a8] sm:$0xff] }
  0xef   : > { %2776 = vmatpush2.bf16.msra.mxu0 %v3878_v35  ;;  %v3824_v35 = vcombine.low %v642_v21, %v646_v22  ;;  %v470_v9 = vld [vmem:[%s4429_s11 + $0x468] sm:$0xff] }
  0xf0   : > { %2817 = vmatpush2.bf16.msra.mxu1 %v3624_v36  ;;  %2777 = vmatprep.subr.bf16.mxu0 %v3871_v37  ;;  %v3689_v36 = vcombine.high %v506_v29, %v510_v30  ;;  %v3817_v37 = vcombine.high %v634_v32, %v638_v33  ;;  %v594_v10 = vld [vmem:[%s4429_s11 + $0x848] sm:$0xff] }
  0xf1   : > { %2818 = vmatprep.subr.bf16.mxu1 %v3617_v38  ;;  %v498_v38 = vld [vmem:[%s4429_s11 + $0x548] sm:$0xff] }
  0xf2   : > { %v3680_v50 = vcombine.low %v498_v38, %v502_v39  ;;  %v598_v11 = vld [vmem:[%s4429_s11 + $0x868] sm:$0xff] }
  0xf3   : > { %2778 = vmatpush2.bf16.msra.mxu0 %v3870_v43  ;;  %v3816_v43 = vcombine.low %v634_v32, %v638_v33  ;;  %v462_v18 = vld [vmem:[%s4429_s11 + $0x428] sm:$0xff] }
  0xf4   : > { %2819 = vmatpush2.bf16.msra.mxu1 %v3616_v44  ;;  %2779 = vmatprep.subr.bf16.mxu0 %v3863_v45  ;;  %v3681_v44 = vcombine.high %v498_v38, %v502_v39  ;;  %v3809_v45 = vcombine.high %v626_v40, %v630_v41  ;;  %v586_v19 = vld [vmem:[%s4429_s11 + $0x808] sm:$0xff] }
  0xf5   : > { %2820 = vmatprep.subr.bf16.mxu1 %v3609_v46  ;;  %v490_v46 = vld [vmem:[%s4429_s11 + $0x508] sm:$0xff] }
  0xf6   : > { %v3672_v60 = vcombine.low %v490_v46, %v494_v47  ;;  %v590_v21 = vld [vmem:[%s4429_s11 + $0x828] sm:$0xff] }
  0xf7   : > { %2780 = vmatpush2.bf16.msra.mxu0 %v3862_v51  ;;  %v3808_v51 = vcombine.low %v626_v40, %v630_v41  ;;  %v706_v29 = vld [vmem:[%s4429_s11 + $0xbc8] sm:$0xff]  ;;  %v3768_v33 = vcombine.low %v586_v19, %v590_v21 }
  0xf8   : > { %2821 = vmatpush2.bf16.msra.mxu1 %v3608_v52  ;;  %2781 = vmatprep.subr.bf16.mxu0 %v3855_v53  ;;  %v3673_v52 = vcombine.high %v490_v46, %v494_v47  ;;  %v3801_v53 = vcombine.high %v618_v48, %v622_v49  ;;  %v710_v30 = vld [vmem:[%s4429_s11 + $0xbe8] sm:$0xff] }
  0xf9   : > { %2822 = vmatprep.subr.bf16.mxu1 %v3601_v54  ;;  %v482_v54 = vld [vmem:[%s4429_s11 + $0x4c8] sm:$0xff]  ;;  %v3888_v41 = vcombine.low %v706_v29, %v710_v30 }
  0xfa   : > { %v3664_v4 = vcombine.low %v482_v54, %v486_v55  ;;  %v698_v38 = vld [vmem:[%s4429_s11 + $0xb88] sm:$0xff] }
  0xfb   : > { %2782 = vmatpush2.bf16.msra.mxu0 %v3854_v61  ;;  %v3800_v61 = vcombine.low %v618_v48, %v622_v49  ;;  %v702_v39 = vld [vmem:[%s4429_s11 + $0xba8] sm:$0xff] }
  0xfc   : > { %2823 = vmatpush2.bf16.msra.mxu1 %v3600_v62  ;;  %2783 = vmatprep.subr.bf16.mxu0 %v3847_v63  ;;  %v3665_v62 = vcombine.high %v482_v54, %v486_v55  ;;  %v3793_v63 = vcombine.high %v610_v56, %v614_v57  ;;  %v690_v46 = vld [vmem:[%s4429_s11 + $0xb48] sm:$0xff]  ;;  %v3880_v49 = vcombine.low %v698_v38, %v702_v39 }
  0xfd   : > { %2824 = vmatprep.subr.bf16.mxu1 %v3593_v0  ;;  %v474_v0 = vld [vmem:[%s4429_s11 + $0x488] sm:$0xff] }
  0xfe   : > { %v3656_v12 = vcombine.low %v474_v0, %v478_v1  ;;  %v694_v47 = vld [vmem:[%s4429_s11 + $0xb68] sm:$0xff] }
  0xff   : > { %2784 = vmatpush2.bf16.msra.mxu0 %v3846_v5  ;;  %v3792_v5 = vcombine.low %v610_v56, %v614_v57  ;;  %v682_v54 = vld [vmem:[%s4429_s11 + $0xb08] sm:$0xff]  ;;  %v3872_v57 = vcombine.low %v690_v46, %v694_v47 }
 0x100   : > { %2825 = vmatpush2.bf16.msra.mxu1 %v3592_v6  ;;  %2785 = vmatprep.subr.bf16.mxu0 %v3839_v7  ;;  %v3657_v6 = vcombine.high %v474_v0, %v478_v1  ;;  %v3785_v7 = vcombine.high %v602_v2, %v606_v3  ;;  %v686_v55 = vld [vmem:[%s4429_s11 + $0xb28] sm:$0xff] }
 0x101   : > { %2826 = vmatprep.subr.bf16.mxu1 %v3585_v8  ;;  %v466_v8 = vld [vmem:[%s4429_s11 + $0x448] sm:$0xff] }
 0x102   : > { %v3648_v22 = vcombine.low %v466_v8, %v470_v9  ;;  %v674_v0 = vld [vmem:[%s4429_s11 + $0xac8] sm:$0xff] }
 0x103   : > { %2786 = vmatpush2.bf16.msra.mxu0 %v3838_v13  ;;  %v3784_v13 = vcombine.low %v602_v2, %v606_v3  ;;  %v678_v1 = vld [vmem:[%s4429_s11 + $0xae8] sm:$0xff]  ;;  %v3864_v3 = vcombine.low %v682_v54, %v686_v55 }
 0x104   : > { %2827 = vmatpush2.bf16.msra.mxu1 %v3584_v14  ;;  %2787 = vmatprep.subr.bf16.mxu0 %v3831_v15  ;;  %v3649_v14 = vcombine.high %v466_v8, %v470_v9  ;;  %v3777_v15 = vcombine.high %v594_v10, %v598_v11  ;;  %v666_v8 = vld [vmem:[%s4429_s11 + $0xa88] sm:$0xff] }
 0x105   : > { %2828 = vmatprep.subr.bf16.mxu1 %v3577_v17  ;;  %v458_v17 = vld [vmem:[%s4429_s11 + $0x408] sm:$0xff] }
 0x106   : > { %v3641_v24 = vcombine.high %v458_v17, %v462_v18  ;;  %v3640_v32 = vcombine.low %v458_v17, %v462_v18  ;;  %v670_v9 = vld [vmem:[%s4429_s11 + $0xaa8] sm:$0xff] }
 0x107   : > { %2788 = vmatpush2.bf16.msra.mxu0 %v3830_v23  ;;  %v3776_v23 = vcombine.low %v594_v10, %v598_v11  ;;  %v3856_v11 = vcombine.low %v674_v0, %v678_v1  ;;  %v658_v17 = vld [vmem:[%s4429_s11 + $0xa48] sm:$0xff] }
 0x108   : > { %2829 = vmatpush2.bf16.msra.mxu1 %v3576_v25  ;;  %2839 = vmatprep.subr.bf16.mxu0 %v3697_v26  ;;  %v3769_v25 = vcombine.high %v586_v19, %v590_v21  ;;  %v578_v26 = vld [vmem:[%s4429_s11 + $0x7c8] sm:$0xff]  ;;  %v3848_v21 = vcombine.low %v666_v8, %v670_v9 }
 0x109   : > { %2880 = vmatprep.subr.bf16.mxu1 %v3825_v28  ;;  %v582_v28 = vld [vmem:[%s4429_s11 + $0x7e8] sm:$0xff] }
 0x10a   : > { %2790 = vmatmul.mubr.bf16.vlgmr.msra.gmra.mxu0 %v4592_v31  ;;  %v3760_v40 = vcombine.low %v578_v26, %v582_v28  ;;  %v662_v18 = vld [vmem:[%s4429_s11 + $0xa68] sm:$0xff] }
 0x10b   : > { %2831 = vmatmul.mubr.bf16.vlgmr.msra.gmra.mxu1 %v4518_v16  ;;  %2840 = vmatpush1.bf16.msra.mxu0 %v3696_v34  ;;  %v3761_v34 = vcombine.high %v578_v26, %v582_v28  ;;  %v650_v26 = vld [vmem:[%s4429_s11 + $0xa08] sm:$0xff] }
 0x10c   : > { %2881 = vmatpush1.bf16.msra.mxu1 %v3824_v35  ;;  %2841 = vmatprep.subr.bf16.mxu0 %v3689_v36  ;;  %v3889_v35 = vcombine.high %v706_v29, %v710_v30  ;;  %v570_v36 = vld [vmem:[%s4429_s11 + $0x788] sm:$0xff]  ;;  %v3840_v30 = vcombine.low %v658_v17, %v662_v18 }
 0x10d   : > { %2882 = vmatprep.subr.bf16.mxu1 %v3817_v37  ;;  %2871 = vmatprep.mubr.bf16.mxu0 %v4474_v59  ;;  %v574_v37 = vld [vmem:[%s4429_s11 + $0x7a8] sm:$0xff] }
 0x10e   : > { %2912 = vmatprep.mubr.bf16.mxu1 %v4526_v27  ;;  %v3752_v48 = vcombine.low %v570_v36, %v574_v37  ;;  %v654_v28 = vld [vmem:[%s4429_s11 + $0xa28] sm:$0xff] }
 0x10f   : > { %2842 = vmatpush1.bf16.msra.mxu0 %v3688_v42  ;;  %v3753_v42 = vcombine.high %v570_v36, %v574_v37  ;;  %v515_v36 = vld [vmem:[%s4429_s11 + $0x5d0] sm:$0xff] }
 0x110   : > { %2883 = vmatpush1.bf16.msra.mxu1 %v3816_v43  ;;  %2843 = vmatprep.subr.bf16.mxu0 %v3681_v44  ;;  %v3881_v43 = vcombine.high %v698_v38, %v702_v39  ;;  %v562_v44 = vld [vmem:[%s4429_s11 + $0x748] sm:$0xff]  ;;  %v519_v37 = vld [vmem:[%s4429_s11 + $0x5f0] sm:$0xff]  ;;  %v3832_v39 = vcombine.low %v650_v26, %v654_v28 }
 0x111   : > { %2884 = vmatprep.subr.bf16.mxu1 %v3809_v45  ;;  %v566_v45 = vld [vmem:[%s4429_s11 + $0x768] sm:$0xff] }
 0x112   : > { %v3744_v56 = vcombine.low %v562_v44, %v566_v45 }
 0x113   : > { %2844 = vmatpush1.bf16.msra.mxu0 %v3680_v50  ;;  %v3745_v50 = vcombine.high %v562_v44, %v566_v45  ;;  %v507_v44 = vld [vmem:[%s4429_s11 + $0x590] sm:$0xff] }
 0x114   : > { %2885 = vmatpush1.bf16.msra.mxu1 %v3808_v51  ;;  %2845 = vmatprep.subr.bf16.mxu0 %v3673_v52  ;;  %v3873_v51 = vcombine.high %v690_v46, %v694_v47  ;;  %v554_v52 = vld [vmem:[%s4429_s11 + $0x708] sm:$0xff]  ;;  %v511_v45 = vld [vmem:[%s4429_s11 + $0x5b0] sm:$0xff]  ;;  %v3698_v47 = vcombine.low %v515_v36, %v519_v37 }
 0x115   : > { %2886 = vmatprep.subr.bf16.mxu1 %v3801_v53  ;;  %v558_v53 = vld [vmem:[%s4429_s11 + $0x728] sm:$0xff] }
 0x116   : > { %v3736_v2 = vcombine.low %v554_v52, %v558_v53 }
 0x117   : > { %2846 = vmatpush1.bf16.msra.mxu0 %v3672_v60  ;;  %v3737_v60 = vcombine.high %v554_v52, %v558_v53  ;;  %v499_v52 = vld [vmem:[%s4429_s11 + $0x550] sm:$0xff] }
 0x118   : > { %2887 = vmatpush1.bf16.msra.mxu1 %v3800_v61  ;;  %2847 = vmatprep.subr.bf16.mxu0 %v3665_v62  ;;  %v3865_v61 = vcombine.high %v682_v54, %v686_v55  ;;  %v546_v62 = vld [vmem:[%s4429_s11 + $0x6c8] sm:$0xff]  ;;  %v503_v53 = vld [vmem:[%s4429_s11 + $0x570] sm:$0xff]  ;;  %v3690_v55 = vcombine.low %v507_v44, %v511_v45 }
 0x119   : > { %2888 = vmatprep.subr.bf16.mxu1 %v3793_v63  ;;  %v550_v63 = vld [vmem:[%s4429_s11 + $0x6e8] sm:$0xff] }
 0x11a   : > { %v3728_v10 = vcombine.low %v546_v62, %v550_v63 }
 0x11b   : > { %2848 = vmatpush1.bf16.msra.mxu0 %v3664_v4  ;;  %v3729_v4 = vcombine.high %v546_v62, %v550_v63  ;;  %v491_v62 = vld [vmem:[%s4429_s11 + $0x510] sm:$0xff] }
 0x11c   : > { %2889 = vmatpush1.bf16.msra.mxu1 %v3792_v5  ;;  %2849 = vmatprep.subr.bf16.mxu0 %v3657_v6  ;;  %v3857_v5 = vcombine.high %v674_v0, %v678_v1  ;;  %v538_v6 = vld [vmem:[%s4429_s11 + $0x688] sm:$0xff]  ;;  %v495_v63 = vld [vmem:[%s4429_s11 + $0x530] sm:$0xff]  ;;  %v3682_v1 = vcombine.low %v499_v52, %v503_v53 }
 0x11d   : > { %2890 = vmatprep.subr.bf16.mxu1 %v3785_v7  ;;  %v542_v7 = vld [vmem:[%s4429_s11 + $0x6a8] sm:$0xff] }
 0x11e   : > { %v3720_v19 = vcombine.low %v538_v6, %v542_v7 }
 0x11f   : > { %2850 = vmatpush1.bf16.msra.mxu0 %v3656_v12  ;;  %v3721_v12 = vcombine.high %v538_v6, %v542_v7  ;;  %v483_v6 = vld [vmem:[%s4429_s11 + $0x4d0] sm:$0xff] }
 0x120   : > { %2891 = vmatpush1.bf16.msra.mxu1 %v3784_v13  ;;  %2851 = vmatprep.subr.bf16.mxu0 %v3649_v14  ;;  %v3849_v13 = vcombine.high %v666_v8, %v670_v9  ;;  %v530_v14 = vld [vmem:[%s4429_s11 + $0x648] sm:$0xff]  ;;  %v487_v7 = vld [vmem:[%s4429_s11 + $0x4f0] sm:$0xff]  ;;  %v3674_v9 = vcombine.low %v491_v62, %v495_v63 }
 0x121   : > { %2892 = vmatprep.subr.bf16.mxu1 %v3777_v15  ;;  %v534_v15 = vld [vmem:[%s4429_s11 + $0x668] sm:$0xff] }
 0x122   : > { %v3712_v29 = vcombine.low %v530_v14, %v534_v15 }
 0x123   : > { %2852 = vmatpush1.bf16.msra.mxu0 %v3648_v22  ;;  %v3713_v22 = vcombine.high %v530_v14, %v534_v15  ;;  %v475_v14 = vld [vmem:[%s4429_s11 + $0x490] sm:$0xff] }
 0x124   : > { %2893 = vmatpush1.bf16.msra.mxu1 %v3776_v23  ;;  %2853 = vmatprep.subr.bf16.mxu0 %v3641_v24  ;;  %v3841_v23 = vcombine.high %v658_v17, %v662_v18  ;;  %v522_v24 = vld [vmem:[%s4429_s11 + $0x608] sm:$0xff]  ;;  %v479_v15 = vld [vmem:[%s4429_s11 + $0x4b0] sm:$0xff]  ;;  %v3666_v18 = vcombine.low %v483_v6, %v487_v7 }
 0x125   : > { %2894 = vmatprep.subr.bf16.mxu1 %v3769_v25  ;;  %v526_v25 = vld [vmem:[%s4429_s11 + $0x628] sm:$0xff] }
 0x126   : > { %v3704_v38 = vcombine.low %v522_v24, %v526_v25 }
 0x127   : > { %2854 = vmatpush1.bf16.msra.mxu0 %v3640_v32  ;;  %v3705_v32 = vcombine.high %v522_v24, %v526_v25  ;;  %v467_v24 = vld [vmem:[%s4429_s11 + $0x450] sm:$0xff] }
 0x128   : > { %2895 = vmatpush1.bf16.msra.mxu1 %v3768_v33  ;;  %2855 = vmatprep.subr.bf16.mxu0 %v3761_v34  ;;  %v3833_v33 = vcombine.high %v650_v26, %v654_v28  ;;  %v387_v34 = vld [vmem:[%s4429_s11 + $0x1d0] sm:$0xff]  ;;  %v3658_v28 = vcombine.low %v475_v14, %v479_v15 }
 0x129   : > { %2896 = vmatprep.subr.bf16.mxu1 %v3889_v35  ;;  %v391_v35 = vld [vmem:[%s4429_s11 + $0x1f0] sm:$0xff] }
 0x12a   : > { %v3570_v46 = vcombine.low %v387_v34, %v391_v35  ;;  %v471_v25 = vld [vmem:[%s4429_s11 + $0x470] sm:$0xff] }
 0x12b   : > { %2856 = vmatpush2.bf16.msra.mxu0 %v3760_v40  ;;  %v3571_v40 = vcombine.high %v387_v34, %v391_v35  ;;  %v459_v34 = vld [vmem:[%s4429_s11 + $0x410] sm:$0xff] }
 0x12c   : > { %2897 = vmatpush2.bf16.msra.mxu1 %v3888_v41  ;;  %2857 = vmatprep.subr.bf16.mxu0 %v3753_v42  ;;  %v3699_v41 = vcombine.high %v515_v36, %v519_v37  ;;  %v379_v42 = vld [vmem:[%s4429_s11 + $0x190] sm:$0xff]  ;;  %v3650_v37 = vcombine.low %v467_v24, %v471_v25 }
 0x12d   : > { %2898 = vmatprep.subr.bf16.mxu1 %v3881_v43  ;;  %v383_v43 = vld [vmem:[%s4429_s11 + $0x1b0] sm:$0xff] }
 0x12e   : > { %v3562_v54 = vcombine.low %v379_v42, %v383_v43  ;;  %v463_v35 = vld [vmem:[%s4429_s11 + $0x430] sm:$0xff] }
 0x12f   : > { %2858 = vmatpush2.bf16.msra.mxu0 %v3752_v48  ;;  %v3563_v48 = vcombine.high %v379_v42, %v383_v43  ;;  %v579_v42 = vld [vmem:[%s4429_s11 + $0x7d0] sm:$0xff] }
 0x130   : > { %2899 = vmatpush2.bf16.msra.mxu1 %v3880_v49  ;;  %2859 = vmatprep.subr.bf16.mxu0 %v3745_v50  ;;  %v3691_v49 = vcombine.high %v507_v44, %v511_v45  ;;  %v371_v50 = vld [vmem:[%s4429_s11 + $0x150] sm:$0xff]  ;;  %v3642_v45 = vcombine.low %v459_v34, %v463_v35 }
 0x131   : > { %2900 = vmatprep.subr.bf16.mxu1 %v3873_v51  ;;  %v375_v51 = vld [vmem:[%s4429_s11 + $0x170] sm:$0xff] }
 0x132   : > { %v3554_v0 = vcombine.low %v371_v50, %v375_v51  ;;  %v583_v43 = vld [vmem:[%s4429_s11 + $0x7f0] sm:$0xff] }
 0x133   : > { %2860 = vmatpush2.bf16.msra.mxu0 %v3744_v56  ;;  %v3555_v56 = vcombine.high %v371_v50, %v375_v51  ;;  %v571_v50 = vld [vmem:[%s4429_s11 + $0x790] sm:$0xff] }
 0x134   : > { %2901 = vmatpush2.bf16.msra.mxu1 %v3872_v57  ;;  %2861 = vmatprep.subr.bf16.mxu0 %v3737_v60  ;;  %v3683_v57 = vcombine.high %v499_v52, %v503_v53  ;;  %v363_v60 = vld [vmem:[%s4429_s11 + $0x110] sm:$0xff]  ;;  %v3762_v53 = vcombine.low %v579_v42, %v583_v43 }
 0x135   : > { %2902 = vmatprep.subr.bf16.mxu1 %v3865_v61  ;;  %v367_v61 = vld [vmem:[%s4429_s11 + $0x130] sm:$0xff] }
 0x136   : > { %v3546_v8 = vcombine.low %v363_v60, %v367_v61  ;;  %v575_v51 = vld [vmem:[%s4429_s11 + $0x7b0] sm:$0xff] }
 0x137   : > { %2862 = vmatpush2.bf16.msra.mxu0 %v3736_v2  ;;  %v3547_v2 = vcombine.high %v363_v60, %v367_v61  ;;  %v563_v60 = vld [vmem:[%s4429_s11 + $0x750] sm:$0xff] }
 0x138   : > { %2903 = vmatpush2.bf16.msra.mxu1 %v3864_v3  ;;  %2863 = vmatprep.subr.bf16.mxu0 %v3729_v4  ;;  %v3675_v3 = vcombine.high %v491_v62, %v495_v63  ;;  %v355_v4 = vld [vmem:[%s4429_s11 + $0xd0] sm:$0xff]  ;;  %v3754_v63 = vcombine.low %v571_v50, %v575_v51 }
 0x139   : > { %2904 = vmatprep.subr.bf16.mxu1 %v3857_v5  ;;  %v359_v5 = vld [vmem:[%s4429_s11 + $0xf0] sm:$0xff] }
 0x13a   : > { %v3538_v17 = vcombine.low %v355_v4, %v359_v5  ;;  %v567_v61 = vld [vmem:[%s4429_s11 + $0x770] sm:$0xff] }
 0x13b   : > { %2864 = vmatpush2.bf16.msra.mxu0 %v3728_v10  ;;  %v3539_v10 = vcombine.high %v355_v4, %v359_v5  ;;  %v555_v4 = vld [vmem:[%s4429_s11 + $0x710] sm:$0xff] }
 0x13c   : > { %2905 = vmatpush2.bf16.msra.mxu1 %v3856_v11  ;;  %2865 = vmatprep.subr.bf16.mxu0 %v3721_v12  ;;  %v3667_v11 = vcombine.high %v483_v6, %v487_v7  ;;  %v347_v12 = vld [vmem:[%s4429_s11 + $0x90] sm:$0xff]  ;;  %v3746_v7 = vcombine.low %v563_v60, %v567_v61 }
 0x13d   : > { %2906 = vmatprep.subr.bf16.mxu1 %v3849_v13  ;;  %v351_v13 = vld [vmem:[%s4429_s11 + $0xb0] sm:$0xff] }
 0x13e   : > { %v3530_v26 = vcombine.low %v347_v12, %v351_v13  ;;  %v559_v5 = vld [vmem:[%s4429_s11 + $0x730] sm:$0xff] }
 0x13f   : > { %2866 = vmatpush2.bf16.msra.mxu0 %v3720_v19  ;;  %v3531_v19 = vcombine.high %v347_v12, %v351_v13  ;;  %v547_v12 = vld [vmem:[%s4429_s11 + $0x6d0] sm:$0xff] }
 0x140   : > { %2907 = vmatpush2.bf16.msra.mxu1 %v3848_v21  ;;  %2867 = vmatprep.subr.bf16.mxu0 %v3713_v22  ;;  %v3659_v21 = vcombine.high %v475_v14, %v479_v15  ;;  %v339_v22 = vld [vmem:[%s4429_s11 + $0x50] sm:$0xff]  ;;  %v3738_v15 = vcombine.low %v555_v4, %v559_v5 }
 0x141   : > { %2908 = vmatprep.subr.bf16.mxu1 %v3841_v23  ;;  %v343_v23 = vld [vmem:[%s4429_s11 + $0x70] sm:$0xff] }
 0x142   : > { %v3522_v36 = vcombine.low %v339_v22, %v343_v23  ;;  %v551_v13 = vld [vmem:[%s4429_s11 + $0x6f0] sm:$0xff] }
 0x143   : > { %2868 = vmatpush2.bf16.msra.mxu0 %v3712_v29  ;;  %v3523_v29 = vcombine.high %v339_v22, %v343_v23  ;;  %v539_v22 = vld [vmem:[%s4429_s11 + $0x690] sm:$0xff] }
 0x144   : > { %2909 = vmatpush2.bf16.msra.mxu1 %v3840_v30  ;;  %2869 = vmatprep.subr.bf16.mxu0 %v3705_v32  ;;  %v3651_v30 = vcombine.high %v467_v24, %v471_v25  ;;  %v331_v32 = vld [vmem:[%s4429_s11 + $0x10] sm:$0xff]  ;;  %v3730_v25 = vcombine.low %v547_v12, %v551_v13 }
 0x145   : > { %2910 = vmatprep.subr.bf16.mxu1 %v3833_v33  ;;  %v335_v33 = vld [vmem:[%s4429_s11 + $0x30] sm:$0xff] }
 0x146   : > { %v3514_v44 = vcombine.low %v331_v32, %v335_v33  ;;  %v543_v23 = vld [vmem:[%s4429_s11 + $0x6b0] sm:$0xff] }
 0x147   : > { %2870 = vmatpush2.bf16.msra.mxu0 %v3704_v38  ;;  %v3515_v38 = vcombine.high %v331_v32, %v335_v33  ;;  %v531_v32 = vld [vmem:[%s4429_s11 + $0x650] sm:$0xff] }
 0x148   : > { %2911 = vmatpush2.bf16.msra.mxu1 %v3832_v39  ;;  %2921 = vmatprep.subr.bf16.mxu0 %v3571_v40  ;;  %v3643_v39 = vcombine.high %v459_v34, %v463_v35  ;;  %v451_v40 = vld [vmem:[%s4429_s11 + $0x3d0] sm:$0xff]  ;;  %v715_v35 = vlaneseq }
 0x149   : > { %2962 = vmatprep.subr.bf16.mxu1 %v3699_v41  ;;  %v455_v41 = vld [vmem:[%s4429_s11 + $0x3f0] sm:$0xff] }
 0x14a   : > { %2872 = vmatmul.mubr.bf16.vlgmr.msra.gmra.mxu0 %v4522_v20  ;;  %v3634_v52 = vcombine.low %v451_v40, %v455_v41  ;;  %v535_v33 = vld [vmem:[%s4429_s11 + $0x670] sm:$0xff] }
 0x14b   : > { %2913 = vmatmul.mubr.bf16.vlgmr.msra.gmra.mxu1 %v4592_v31  ;;  %2922 = vmatpush1.bf16.msra.mxu0 %v3570_v46  ;;  %v3635_v46 = vcombine.high %v451_v40, %v455_v41  ;;  %v399_v40 = vld [vmem:[%s4429_s11 + $0x230] sm:$0xff] }
 0x14c   : > { %2963 = vmatpush1.bf16.msra.mxu1 %v3698_v47  ;;  %2923 = vmatprep.subr.bf16.mxu0 %v3563_v48  ;;  %v3763_v47 = vcombine.high %v579_v42, %v583_v43  ;;  %v443_v48 = vld [vmem:[%s4429_s11 + $0x390] sm:$0xff] }
 0x14d   : > { %2964 = vmatprep.subr.bf16.mxu1 %v3691_v49  ;;  %2953 = vmatprep.mubr.bf16.mxu0 %v4472_v58  ;;  %v447_v49 = vld [vmem:[%s4429_s11 + $0x3b0] sm:$0xff] }
 0x14e   : > { %2994 = vmatprep.mubr.bf16.mxu1 %v4474_v59  ;;  %v3626_v62 = vcombine.low %v443_v48, %v447_v49  ;;  %v523_v41 = vld [vmem:[%s4429_s11 + $0x610] sm:$0xff] }
 0x14f   : > { %2924 = vmatpush1.bf16.msra.mxu0 %v3562_v54  ;;  %v3627_v54 = vcombine.high %v443_v48, %v447_v49  ;;  %v527_v42 = vld [vmem:[%s4429_s11 + $0x630] sm:$0xff] }
 0x150   : > { %2965 = vmatpush1.bf16.msra.mxu1 %v3690_v55  ;;  %2925 = vmatprep.subr.bf16.mxu0 %v3555_v56  ;;  %v3755_v55 = vcombine.high %v571_v50, %v575_v51  ;;  %v435_v56 = vld [vmem:[%s4429_s11 + $0x350] sm:$0xff]  ;;  %v388_v50 = vld [vmem:[%s4429_s11 + $0x1d8] sm:$0xff] }
 0x151   : > { %2966 = vmatprep.subr.bf16.mxu1 %v3683_v57  ;;  %v439_v57 = vld [vmem:[%s4429_s11 + $0x370] sm:$0xff]  ;;  %v392_v51 = vld [vmem:[%s4429_s11 + $0x1f8] sm:$0xff] }
 0x152   : > { %v3618_v6 = vcombine.low %v435_v56, %v439_v57  ;;  %v643_v48 = vld [vmem:[%s4429_s11 + $0x9d0] sm:$0xff] }
 0x153   : > { %2926 = vmatpush1.bf16.msra.mxu0 %v3554_v0  ;;  %v3619_v0 = vcombine.high %v435_v56, %v439_v57  ;;  %v647_v49 = vld [vmem:[%s4429_s11 + $0x9f0] sm:$0xff]  ;;  %v3573_v57 = vcombine.high %v388_v50, %v392_v51 }
 0x154   : > { %2967 = vmatpush1.bf16.msra.mxu1 %v3682_v1  ;;  %2927 = vmatprep.subr.bf16.mxu0 %v3547_v2  ;;  %v3747_v1 = vcombine.high %v563_v60, %v567_v61  ;;  %v427_v2 = vld [vmem:[%s4429_s11 + $0x310] sm:$0xff]  ;;  %v3827_v56 = vcombine.high %v643_v48, %v647_v49 }
 0x155   : > { %2968 = vmatprep.subr.bf16.mxu1 %v3675_v3  ;;  %v431_v3 = vld [vmem:[%s4429_s11 + $0x330] sm:$0xff] }
 0x156   : > { %v3610_v14 = vcombine.low %v427_v2, %v431_v3  ;;  %v635_v61 = vld [vmem:[%s4429_s11 + $0x990] sm:$0xff] }
 0x157   : > { %2928 = vmatpush1.bf16.msra.mxu0 %v3546_v8  ;;  %v3611_v8 = vcombine.high %v427_v2, %v431_v3  ;;  %v3826_v2 = vcombine.low %v643_v48, %v647_v49  ;;  %v3572_v3 = vcombine.low %v388_v50, %v392_v51  ;;  %v607_v48 = vld [vmem:[%s4429_s11 + $0x8b0] sm:$0xff]  ;;  %v348_v49 = vld [vmem:[%s4429_s11 + $0x98] sm:$0xff] }
 0x158   : > { %2969 = vmatpush1.bf16.msra.mxu1 %v3674_v9  ;;  %2929 = vmatprep.subr.bf16.mxu0 %v3539_v10  ;;  %v3739_v9 = vcombine.high %v555_v4, %v559_v5  ;;  %v419_v10 = vld [vmem:[%s4429_s11 + $0x2d0] sm:$0xff]  ;;  %v352_v50 = vld [vmem:[%s4429_s11 + $0xb8] sm:$0xff] }
 0x159   : > { %2970 = vmatprep.subr.bf16.mxu1 %v3667_v11  ;;  %v423_v11 = vld [vmem:[%s4429_s11 + $0x2f0] sm:$0xff] }
 0x15a   : > { %v3602_v24 = vcombine.low %v419_v10, %v423_v11 }
 0x15b   : > { %2930 = vmatpush1.bf16.msra.mxu0 %v3538_v17  ;;  %v3603_v17 = vcombine.high %v419_v10, %v423_v11  ;;  %v372_v10 = vld [vmem:[%s4429_s11 + $0x158] sm:$0xff] }
 0x15c   : > { %2971 = vmatpush1.bf16.msra.mxu1 %v3666_v18  ;;  %2931 = vmatprep.subr.bf16.mxu0 %v3531_v19  ;;  %v3731_v18 = vcombine.high %v547_v12, %v551_v13  ;;  %v411_v19 = vld [vmem:[%s4429_s11 + $0x290] sm:$0xff]  ;;  %v376_v11 = vld [vmem:[%s4429_s11 + $0x178] sm:$0xff] }
 0x15d   : > { %2972 = vmatprep.subr.bf16.mxu1 %v3659_v21  ;;  %v415_v21 = vld [vmem:[%s4429_s11 + $0x2b0] sm:$0xff] }
 0x15e   : > { %v3594_v34 = vcombine.low %v411_v19, %v415_v21 }
 0x15f   : > { %2932 = vmatpush1.bf16.msra.mxu0 %v3530_v26  ;;  %v3595_v26 = vcombine.high %v411_v19, %v415_v21 }
 0x160   : > { %2973 = vmatpush1.bf16.msra.mxu1 %v3658_v28  ;;  %2933 = vmatprep.subr.bf16.mxu0 %v3523_v29  ;;  %v3723_v28 = vcombine.high %v539_v22, %v543_v23  ;;  %v403_v29 = vld [vmem:[%s4429_s11 + $0x250] sm:$0xff] }
 0x161   : > { %2974 = vmatprep.subr.bf16.mxu1 %v3651_v30  ;;  %v407_v30 = vld [vmem:[%s4429_s11 + $0x270] sm:$0xff] }
 0x162   : > { %v3586_v43 = vcombine.low %v403_v29, %v407_v30 }
 0x163   : > { %2934 = vmatpush1.bf16.msra.mxu0 %v3522_v36  ;;  %v3722_v36 = vcombine.low %v539_v22, %v543_v23  ;;  %v3557_v23 = vcombine.high %v372_v10, %v376_v11 }
 0x164   : > { %2975 = vmatpush1.bf16.msra.mxu1 %v3650_v37  ;;  %2935 = vmatprep.subr.bf16.mxu0 %v3515_v38  ;;  %v3587_v37 = vcombine.high %v403_v29, %v407_v30  ;;  %v3715_v38 = vcombine.high %v531_v32, %v535_v33  ;;  %v368_v29 = vld [vmem:[%s4429_s11 + $0x138] sm:$0xff] }
 0x165   : > { %2976 = vmatprep.subr.bf16.mxu1 %v3643_v39  ;;  %v395_v39 = vld [vmem:[%s4429_s11 + $0x210] sm:$0xff] }
 0x167   : > { %2936 = vmatpush1.bf16.msra.mxu0 %v3514_v44  ;;  %v4724_v44 = vshrl.u32 %v715_v35, 7  ;;  %v3556_v35 = vcombine.low %v372_v10, %v376_v11 }
 0x168   : > { %2977 = vmatpush1.bf16.msra.mxu1 %v3642_v45  ;;  %2937 = vmatprep.subr.bf16.mxu0 %v3635_v46  ;;  %v3714_v45 = vcombine.low %v531_v32, %v535_v33  ;;  %v3579_v46 = vcombine.high %v395_v39, %v399_v40 }
 0x169   : > { %2978 = vmatprep.subr.bf16.mxu1 %v3763_v47  ;;  %v3707_v47 = vcombine.high %v523_v41, %v527_v42  ;;  %v4737_v60 = vsub.s32 1, %v4724_v44 }
 0x16b   : > { %2938 = vmatpush2.bf16.msra.mxu0 %v3634_v52  ;;  %v3578_v52 = vcombine.low %v395_v39, %v399_v40  ;;  %v611_v39 = vld [vmem:[%s4429_s11 + $0x8d0] sm:$0xff]  ;;  %v356_v40 = vld [vmem:[%s4429_s11 + $0xd8] sm:$0xff] }
 0x16c   : > { %2979 = vmatpush2.bf16.msra.mxu1 %v3762_v53  ;;  %2939 = vmatprep.subr.bf16.mxu0 %v3627_v54  ;;  %v4731_v53 = vsub.s32 0, %v4724_v44  ;;  %v3706_v54 = vcombine.low %v523_v41, %v527_v42  ;;  %v360_v41 = vld [vmem:[%s4429_s11 + $0xf8] sm:$0xff] }
 0x16d   : > { %2980 = vmatprep.subr.bf16.mxu1 %v3755_v55  ;;  %v4734_v55 = vld [vmem:[%s4436_s9] sm:$0xff] }
 0x16e   : > { %v722_v5 = vrot.slane %v4734_v55, %v4737_v60 }
 0x16f   : > { %2940 = vmatpush2.bf16.msra.mxu0 %v3626_v62  ;;  %v639_v62 = vld [vmem:[%s4429_s11 + $0x9b0] sm:$0xff] }
 0x170   : > { %2981 = vmatpush2.bf16.msra.mxu1 %v3754_v63  ;;  %2941 = vmatprep.subr.bf16.mxu0 %v3619_v0  ;;  %v380_v63 = vld [vmem:[%s4429_s11 + $0x198] sm:$0xff]  ;;  %v3819_v4 = vcombine.high %v635_v61, %v639_v62 }
 0x171   : > { %2982 = vmatprep.subr.bf16.mxu1 %v3747_v1  ;;  %v384_v0 = vld [vmem:[%s4429_s11 + $0x1b8] sm:$0xff]  ;;  %v718_v1 = vrot.slane %v4734_v55, %v4731_v53 }
 0x173   : > { %2942 = vmatpush2.bf16.msra.mxu0 %v3618_v6  ;;  %v3565_v6 = vcombine.high %v380_v63, %v384_v0 }
 0x174   : > { %2983 = vmatpush2.bf16.msra.mxu1 %v3746_v7  ;;  %2943 = vmatprep.subr.bf16.mxu0 %v3611_v8  ;;  %v627_v7 = vld [vmem:[%s4429_s11 + $0x950] sm:$0xff] }
 0x175   : > { %2984 = vmatprep.subr.bf16.mxu1 %v3739_v9  ;;  %v631_v8 = vld [vmem:[%s4429_s11 + $0x970] sm:$0xff] }
 0x176   : > { %v3810_v33 = vcombine.low %v627_v7, %v631_v8 }
 0x177   : > { %2944 = vmatpush2.bf16.msra.mxu0 %v3610_v14  ;;  %v3818_v14 = vcombine.low %v635_v61, %v639_v62  ;;  %v599_v61 = vld [vmem:[%s4429_s11 + $0x870] sm:$0xff]  ;;  %v340_v62 = vld [vmem:[%s4429_s11 + $0x58] sm:$0xff] }
 0x178   : > { %2985 = vmatpush2.bf16.msra.mxu1 %v3738_v15  ;;  %2945 = vmatprep.subr.bf16.mxu0 %v3603_v17  ;;  %v3564_v17 = vcombine.low %v380_v63, %v384_v0  ;;  %v344_v63 = vld [vmem:[%s4429_s11 + $0x78] sm:$0xff] }
 0x179   : > { %2986 = vmatprep.subr.bf16.mxu1 %v3731_v18  ;;  %v3811_v18 = vcombine.high %v627_v7, %v631_v8  ;;  %v336_v7 = vld [vmem:[%s4429_s11 + $0x38] sm:$0xff] }
 0x17b   : > { %2946 = vmatpush2.bf16.msra.mxu0 %v3602_v24  ;;  %v619_v24 = vld [vmem:[%s4429_s11 + $0x910] sm:$0xff] }
 0x17c   : > { %2987 = vmatpush2.bf16.msra.mxu1 %v3730_v25  ;;  %2947 = vmatprep.subr.bf16.mxu0 %v3595_v26  ;;  %v623_v25 = vld [vmem:[%s4429_s11 + $0x930] sm:$0xff] }
 0x17d   : > { %2988 = vmatprep.subr.bf16.mxu1 %v3723_v28  ;;  %v364_v28 = vld [vmem:[%s4429_s11 + $0x118] sm:$0xff]  ;;  %v3802_v42 = vcombine.low %v619_v24, %v623_v25 }
 0x17f   : > { %2948 = vmatpush2.bf16.msra.mxu0 %v3594_v34 }
 0x180   : > { %2989 = vmatpush2.bf16.msra.mxu1 %v3722_v36  ;;  %2949 = vmatprep.subr.bf16.mxu0 %v3587_v37  ;;  %v3803_v36 = vcombine.high %v619_v24, %v623_v25  ;;  %v703_v24 = vld [vmem:[%s4429_s11 + $0xbb0] sm:$0xff]  ;;  %v444_v25 = vld [vmem:[%s4429_s11 + $0x398] sm:$0xff] }
 0x181   : > { %2990 = vmatprep.subr.bf16.mxu1 %v3715_v38  ;;  %v3549_v38 = vcombine.high %v364_v28, %v368_v29 }
 0x183   : > { %2950 = vmatpush2.bf16.msra.mxu0 %v3586_v43  ;;  %v3548_v43 = vcombine.low %v364_v28, %v368_v29 }
 0x184   : > { %2991 = vmatpush2.bf16.msra.mxu1 %v3714_v45  ;;  %2951 = vmatprep.subr.bf16.mxu0 %v3579_v46  ;;  %v3541_v46 = vcombine.high %v356_v40, %v360_v41 }
 0x185   : > { %2992 = vmatprep.subr.bf16.mxu1 %v3707_v47  ;;  %v603_v47 = vld [vmem:[%s4429_s11 + $0x890] sm:$0xff] }
 0x186   : > { %v3786_v0 = vcombine.low %v603_v47, %v607_v48 }
 0x187   : > { %2952 = vmatpush2.bf16.msra.mxu0 %v3578_v52  ;;  %v3540_v52 = vcombine.low %v356_v40, %v360_v41  ;;  %v683_v41 = vld [vmem:[%s4429_s11 + $0xb10] sm:$0xff] }
 0x188   : > { %2993 = vmatpush2.bf16.msra.mxu1 %v3706_v54  ;;  %3003 = vmatprep.subr.bf16.mxu0 %v3827_v56  ;;  %v3787_v54 = vcombine.high %v603_v47, %v607_v48  ;;  %v3533_v56 = vcombine.high %v348_v49, %v352_v50 }
 0x189   : > { %3044 = vmatprep.subr.bf16.mxu1 %v3573_v57  ;;  %v595_v57 = vld [vmem:[%s4429_s11 + $0x850] sm:$0xff] }
 0x18a   : > { %v2709_v9 = vpop.f32.mrf.mxu0  ;;  %2954 = vmatmul.mubr.bf16.vlgmr.msra.gmra.mxu0 %v4518_v16  ;;  %v3778_v8 = vcombine.low %v595_v57, %v599_v61 }
 0x18b   : > { %v2710_v12 = vadd.f32 %v2709_v9, %v718_v1  ;;  %v2750_v13 = vpop.f32.mrf.mxu1  ;;  %2995 = vmatmul.mubr.bf16.vlgmr.msra.gmra.mxu1 %v4522_v20  ;;  %3004 = vmatpush1.bf16.msra.mxu0 %v3826_v2  ;;  %v3532_v1 = vcombine.low %v348_v49, %v352_v50  ;;  %v3779_v2 = vcombine.high %v595_v57, %v599_v61  ;;  %v675_v50 = vld [vmem:[%s4429_s11 + $0xad0] sm:$0xff] }
 0x18c   : > { %3045 = vmatpush1.bf16.msra.mxu1 %v3572_v3  ;;  %v2711_v15 = vpop.f32.mrf.mxu0  ;;  %3005 = vmatprep.subr.bf16.mxu0 %v3819_v4  ;;  %v3525_v3 = vcombine.high %v340_v62, %v344_v63  ;;  %v587_v4 = vld [vmem:[%s4429_s11 + $0x810] sm:$0xff]  ;;  %v3524_v9 = vcombine.low %v340_v62, %v344_v63 }
 0x18d   : > { %v4753_v19 = vadd.f32 %v2750_v13, %v2710_v12  ;;  %v2712_v21 = vadd.f32 %v2711_v15, %v722_v5  ;;  %v2752_v22 = vpop.f32.mrf.mxu1  ;;  %3046 = vmatprep.subr.bf16.mxu1 %v3565_v6  ;;  %3035 = vmatprep.mubr.bf16.mxu0 %v4526_v27  ;;  %v591_v5 = vld [vmem:[%s4429_s11 + $0x830] sm:$0xff]  ;;  %v332_v6 = vld [vmem:[%s4429_s11 + $0x18] sm:$0xff] }
 0x18e   : > { %v2713_v26 = vpop.f32.mrf.mxu0  ;;  %3076 = vmatprep.mubr.bf16.mxu1 %v4472_v58  ;;  %v615_v58 = vld [vmem:[%s4429_s11 + $0x8f0] sm:$0xff]  ;;  %v3771_v10 = vcombine.high %v587_v4, %v591_v5  ;;  %v3517_v11 = vcombine.high %v332_v6, %v336_v7  ;;  %v456_v15 = vld [vmem:[%s4429_s11 + $0x3f8] sm:$0xff] }
 0x18f   : > { %v4761_v30 = vadd.f32 %v2752_v22, %v2712_v21  ;;  %v2754_v32 = vpop.f32.mrf.mxu1  ;;  %3006 = vmatpush1.bf16.msra.mxu0 %v3818_v14  ;;  %v3795_v45 = vcombine.high %v611_v39, %v615_v58  ;;  %v3794_v51 = vcombine.low %v611_v39, %v615_v58  ;;  %v707_v12 = vld [vmem:[%s4429_s11 + $0xbd0] sm:$0xff]  ;;  %v452_v14 = vld [vmem:[%s4429_s11 + $0x3d8] sm:$0xff] }
 0x190   : > { %3047 = vmatpush1.bf16.msra.mxu1 %v3564_v17  ;;  %v2714_v34 = vpop.f32.mrf.mxu0  ;;  %3007 = vmatprep.subr.bf16.mxu0 %v3811_v18  ;;  %v711_v13 = vld [vmem:[%s4429_s11 + $0xbf0] sm:$0xff]  ;;  %v3770_v17 = vcombine.low %v587_v4, %v591_v5  ;;  %v3516_v18 = vcombine.low %v332_v6, %v336_v7  ;;  %v3637_v22 = vcombine.high %v452_v14, %v456_v15  ;;  %v448_v26 = vld [vmem:[%s4429_s11 + $0x3b8] sm:$0xff] }
 0x191   : > { %v2755_v37 = vpop.f32.mrf.mxu1  ;;  %3048 = vmatprep.subr.bf16.mxu1 %v3557_v23  ;;  %v3891_v21 = vcombine.high %v707_v12, %v711_v13  ;;  %v699_v23 = vld [vmem:[%s4429_s11 + $0xb90] sm:$0xff]  ;;  %v3890_v28 = vcombine.low %v707_v12, %v711_v13  ;;  %v3636_v29 = vcombine.low %v452_v14, %v456_v15  ;;  %v3628_v39 = vcombine.low %v444_v25, %v448_v26 }
 0x192   : > { %v3883_v32 = vcombine.high %v699_v23, %v703_v24  ;;  %v691_v34 = vld [vmem:[%s4429_s11 + $0xb50] sm:$0xff]  ;;  %v440_v37 = vld [vmem:[%s4429_s11 + $0x378] sm:$0xff] }
 0x193   : > { %3008 = vmatpush1.bf16.msra.mxu0 %v3810_v33  ;;  %v3629_v33 = vcombine.high %v444_v25, %v448_v26  ;;  %v667_v63 = vld [vmem:[%s4429_s11 + $0xa90] sm:$0xff]  ;;  %v516_v26 = vld [vmem:[%s4429_s11 + $0x5d8] sm:$0xff] }
 0x194   : > { %3049 = vmatpush1.bf16.msra.mxu1 %v3556_v35  ;;  %3009 = vmatprep.subr.bf16.mxu0 %v3803_v36  ;;  %v695_v35 = vld [vmem:[%s4429_s11 + $0xb70] sm:$0xff]  ;;  %v436_v36 = vld [vmem:[%s4429_s11 + $0x358] sm:$0xff] }
 0x195   : > { %3050 = vmatprep.subr.bf16.mxu1 %v3549_v38  ;;  %v3882_v38 = vcombine.low %v699_v23, %v703_v24  ;;  %v3875_v58 = vcombine.high %v691_v34, %v695_v35  ;;  %v3621_v40 = vcombine.high %v436_v36, %v440_v37  ;;  %v3620_v47 = vcombine.low %v436_v36, %v440_v37  ;;  %v659_v7 = vld [vmem:[%s4429_s11 + $0xa50] sm:$0xff]  ;;  %v508_v37 = vld [vmem:[%s4429_s11 + $0x598] sm:$0xff] }
 0x196   : > { %v651_v15 = vld [vmem:[%s4429_s11 + $0xa10] sm:$0xff] }
 0x197   : > { %3010 = vmatpush1.bf16.msra.mxu0 %v3802_v42  ;;  %v687_v42 = vld [vmem:[%s4429_s11 + $0xb30] sm:$0xff] }
 0x198   : > { %3051 = vmatpush1.bf16.msra.mxu1 %v3548_v43  ;;  %3011 = vmatprep.subr.bf16.mxu0 %v3795_v45  ;;  %v428_v43 = vld [vmem:[%s4429_s11 + $0x318] sm:$0xff]  ;;  %v3867_v48 = vcombine.high %v683_v41, %v687_v42 }
 0x199   : > { %3052 = vmatprep.subr.bf16.mxu1 %v3541_v46  ;;  %v432_v45 = vld [vmem:[%s4429_s11 + $0x338] sm:$0xff]  ;;  %v3874_v46 = vcombine.low %v691_v34, %v695_v35 }
 0x19a   : > { %v3613_v49 = vcombine.high %v428_v43, %v432_v45  ;;  %v3612_v57 = vcombine.low %v428_v43, %v432_v45  ;;  %v500_v45 = vld [vmem:[%s4429_s11 + $0x558] sm:$0xff] }
 0x19b   : > { %3012 = vmatpush1.bf16.msra.mxu0 %v3794_v51  ;;  %v679_v51 = vld [vmem:[%s4429_s11 + $0xaf0] sm:$0xff] }
 0x19c   : > { %3053 = vmatpush1.bf16.msra.mxu1 %v3540_v52  ;;  %3013 = vmatprep.subr.bf16.mxu0 %v3787_v54  ;;  %v420_v52 = vld [vmem:[%s4429_s11 + $0x2d8] sm:$0xff]  ;;  %v3859_v61 = vcombine.high %v675_v50, %v679_v51 }
 0x19d   : > { %3054 = vmatprep.subr.bf16.mxu1 %v3533_v56  ;;  %v424_v54 = vld [vmem:[%s4429_s11 + $0x2f8] sm:$0xff]  ;;  %v3866_v56 = vcombine.low %v683_v41, %v687_v42 }
 0x19e   : > { %v3605_v62 = vcombine.high %v420_v52, %v424_v54  ;;  %v3604_v4 = vcombine.low %v420_v52, %v424_v54 }
 0x19f   : > { %3014 = vmatpush1.bf16.msra.mxu0 %v3786_v0  ;;  %v671_v0 = vld [vmem:[%s4429_s11 + $0xab0] sm:$0xff] }
 0x1a0   : > { %3055 = vmatpush1.bf16.msra.mxu1 %v3532_v1  ;;  %3015 = vmatprep.subr.bf16.mxu0 %v3779_v2  ;;  %v412_v1 = vld [vmem:[%s4429_s11 + $0x298] sm:$0xff]  ;;  %v3851_v5 = vcombine.high %v667_v63, %v671_v0 }
 0x1a1   : > { %3056 = vmatprep.subr.bf16.mxu1 %v3525_v3  ;;  %v416_v2 = vld [vmem:[%s4429_s11 + $0x2b8] sm:$0xff]  ;;  %v3858_v3 = vcombine.low %v675_v50, %v679_v51 }
 0x1a2   : > { %v3597_v6 = vcombine.high %v412_v1, %v416_v2  ;;  %v3596_v12 = vcombine.low %v412_v1, %v416_v2  ;;  %v620_v1 = vld [vmem:[%s4429_s11 + $0x918] sm:$0xff] }
 0x1a3   : > { %3016 = vmatpush1.bf16.msra.mxu0 %v3778_v8  ;;  %v663_v8 = vld [vmem:[%s4429_s11 + $0xa70] sm:$0xff]  ;;  %v624_v2 = vld [vmem:[%s4429_s11 + $0x938] sm:$0xff] }
 0x1a4   : > { %3057 = vmatpush1.bf16.msra.mxu1 %v3524_v9  ;;  %3017 = vmatprep.subr.bf16.mxu0 %v3771_v10  ;;  %v404_v9 = vld [vmem:[%s4429_s11 + $0x258] sm:$0xff]  ;;  %v3843_v13 = vcombine.high %v659_v7, %v663_v8 }
 0x1a5   : > { %3058 = vmatprep.subr.bf16.mxu1 %v3517_v11  ;;  %v408_v10 = vld [vmem:[%s4429_s11 + $0x278] sm:$0xff]  ;;  %v3850_v11 = vcombine.low %v667_v63, %v671_v0 }
 0x1a6   : > { %v3589_v14 = vcombine.high %v404_v9, %v408_v10  ;;  %v3588_v23 = vcombine.low %v404_v9, %v408_v10  ;;  %v492_v63 = vld [vmem:[%s4429_s11 + $0x518] sm:$0xff] }
 0x1a7   : > { %3018 = vmatpush1.bf16.msra.mxu0 %v3770_v17  ;;  %v655_v17 = vld [vmem:[%s4429_s11 + $0xa30] sm:$0xff]  ;;  %v496_v0 = vld [vmem:[%s4429_s11 + $0x538] sm:$0xff] }
 0x1a8   : > { %3059 = vmatpush1.bf16.msra.mxu1 %v3516_v18  ;;  %3019 = vmatprep.subr.bf16.mxu0 %v3891_v21  ;;  %v396_v18 = vld [vmem:[%s4429_s11 + $0x218] sm:$0xff]  ;;  %v3835_v24 = vcombine.high %v651_v15, %v655_v17 }
 0x1a9   : > { %3060 = vmatprep.subr.bf16.mxu1 %v3637_v22  ;;  %v400_v21 = vld [vmem:[%s4429_s11 + $0x238] sm:$0xff]  ;;  %v3842_v22 = vcombine.low %v659_v7, %v663_v8 }
 0x1aa   : > { %v3581_v25 = vcombine.high %v396_v18, %v400_v21  ;;  %v3580_v34 = vcombine.low %v396_v18, %v400_v21  ;;  %v484_v8 = vld [vmem:[%s4429_s11 + $0x4d8] sm:$0xff] }
 0x1ab   : > { %3020 = vmatpush2.bf16.msra.mxu0 %v3890_v28  ;;  %v520_v28 = vld [vmem:[%s4429_s11 + $0x5f8] sm:$0xff] }
 0x1ac   : > { %3061 = vmatpush2.bf16.msra.mxu1 %v3636_v29  ;;  %3021 = vmatprep.subr.bf16.mxu0 %v3883_v32  ;;  %v644_v29 = vld [vmem:[%s4429_s11 + $0x9d8] sm:$0xff]  ;;  %v3701_v35 = vcombine.high %v516_v26, %v520_v28 }
 0x1ad   : > { %3062 = vmatprep.subr.bf16.mxu1 %v3629_v33  ;;  %v648_v32 = vld [vmem:[%s4429_s11 + $0x9f8] sm:$0xff]  ;;  %v3834_v33 = vcombine.low %v651_v15, %v655_v17 }
 0x1ae   : > { %v3829_v36 = vcombine.high %v644_v29, %v648_v32  ;;  %v3828_v41 = vcombine.low %v644_v29, %v648_v32  ;;  %v488_v9 = vld [vmem:[%s4429_s11 + $0x4f8] sm:$0xff] }
 0x1af   : > { %3022 = vmatpush2.bf16.msra.mxu0 %v3882_v38  ;;  %v512_v38 = vld [vmem:[%s4429_s11 + $0x5b8] sm:$0xff] }
 0x1b0   : > { %3063 = vmatpush2.bf16.msra.mxu1 %v3628_v39  ;;  %3023 = vmatprep.subr.bf16.mxu0 %v3875_v58  ;;  %v636_v39 = vld [vmem:[%s4429_s11 + $0x998] sm:$0xff]  ;;  %v3693_v42 = vcombine.high %v508_v37, %v512_v38  ;;  %v3692_v52 = vcombine.low %v508_v37, %v512_v38 }
 0x1b1   : > { %3064 = vmatprep.subr.bf16.mxu1 %v3621_v40  ;;  %v640_v58 = vld [vmem:[%s4429_s11 + $0x9b8] sm:$0xff]  ;;  %v3700_v40 = vcombine.low %v516_v26, %v520_v28 }
 0x1b2   : > { %v3821_v43 = vcombine.high %v636_v39, %v640_v58  ;;  %v612_v10 = vld [vmem:[%s4429_s11 + $0x8d8] sm:$0xff] }
 0x1b3   : > { %3024 = vmatpush2.bf16.msra.mxu0 %v3874_v46  ;;  %v504_v46 = vld [vmem:[%s4429_s11 + $0x578] sm:$0xff] }
 0x1b4   : > { %3065 = vmatpush2.bf16.msra.mxu1 %v3620_v47  ;;  %3025 = vmatprep.subr.bf16.mxu0 %v3867_v48  ;;  %v628_v48 = vld [vmem:[%s4429_s11 + $0x958] sm:$0xff] }
 0x1b5   : > { %3066 = vmatprep.subr.bf16.mxu1 %v3613_v49  ;;  %v632_v49 = vld [vmem:[%s4429_s11 + $0x978] sm:$0xff] }
 0x1b6   : > { %v476_v15 = vld [vmem:[%s4429_s11 + $0x498] sm:$0xff] }
 0x1b7   : > { %3026 = vmatpush2.bf16.msra.mxu0 %v3866_v56  ;;  %v3820_v56 = vcombine.low %v636_v39, %v640_v58  ;;  %v480_v17 = vld [vmem:[%s4429_s11 + $0x4b8] sm:$0xff] }
 0x1b8   : > { %3067 = vmatpush2.bf16.msra.mxu1 %v3612_v57  ;;  %3027 = vmatprep.subr.bf16.mxu0 %v3859_v61  ;;  %v3685_v57 = vcombine.high %v500_v45, %v504_v46  ;;  %v604_v18 = vld [vmem:[%s4429_s11 + $0x898] sm:$0xff] }
 0x1b9   : > { %3068 = vmatprep.subr.bf16.mxu1 %v3605_v62  ;;  %v608_v21 = vld [vmem:[%s4429_s11 + $0x8b8] sm:$0xff] }
 0x1ba   : > { %v468_v26 = vld [vmem:[%s4429_s11 + $0x458] sm:$0xff] }
 0x1bb   : > { %3028 = vmatpush2.bf16.msra.mxu0 %v3858_v3  ;;  %v472_v28 = vld [vmem:[%s4429_s11 + $0x478] sm:$0xff] }
 0x1bc   : > { %3069 = vmatpush2.bf16.msra.mxu1 %v3604_v4  ;;  %3029 = vmatprep.subr.bf16.mxu0 %v3851_v5  ;;  %v3812_v5 = vcombine.low %v628_v48, %v632_v49  ;;  %v596_v29 = vld [vmem:[%s4429_s11 + $0x858] sm:$0xff] }
 0x1bd   : > { %3070 = vmatprep.subr.bf16.mxu1 %v3597_v6  ;;  %v3677_v6 = vcombine.high %v492_v63, %v496_v0  ;;  %v600_v32 = vld [vmem:[%s4429_s11 + $0x878] sm:$0xff] }
 0x1be   : > { %v460_v37 = vld [vmem:[%s4429_s11 + $0x418] sm:$0xff] }
 0x1bf   : > { %3030 = vmatpush2.bf16.msra.mxu0 %v3850_v11  ;;  %v616_v11 = vld [vmem:[%s4429_s11 + $0x8f8] sm:$0xff] }
 0x1c0   : > { %3071 = vmatpush2.bf16.msra.mxu1 %v3596_v12  ;;  %3031 = vmatprep.subr.bf16.mxu0 %v3843_v13  ;;  %v3804_v12 = vcombine.low %v620_v1, %v624_v2  ;;  %v3669_v13 = vcombine.high %v484_v8, %v488_v9  ;;  %v464_v38 = vld [vmem:[%s4429_s11 + $0x438] sm:$0xff] }
 0x1c1   : > { %3072 = vmatprep.subr.bf16.mxu1 %v3589_v14  ;;  %v3797_v14 = vcombine.high %v612_v10, %v616_v11  ;;  %v588_v39 = vld [vmem:[%s4429_s11 + $0x818] sm:$0xff] }
 0x1c2   : > { %v592_v58 = vld [vmem:[%s4429_s11 + $0x838] sm:$0xff] }
 0x1c3   : > { %3032 = vmatpush2.bf16.msra.mxu0 %v3842_v22  ;;  %v3668_v22 = vcombine.low %v484_v8, %v488_v9 }
 0x1c4   : > { %3073 = vmatpush2.bf16.msra.mxu1 %v3588_v23  ;;  %3033 = vmatprep.subr.bf16.mxu0 %v3835_v24  ;;  %v3796_v23 = vcombine.low %v612_v10, %v616_v11  ;;  %v3661_v24 = vcombine.high %v476_v15, %v480_v17  ;;  %v556_v10 = vld [vmem:[%s4429_s11 + $0x718] sm:$0xff] }
 0x1c5   : > { %3074 = vmatprep.subr.bf16.mxu1 %v3581_v25  ;;  %v3789_v25 = vcombine.high %v604_v18, %v608_v21  ;;  %v560_v11 = vld [vmem:[%s4429_s11 + $0x738] sm:$0xff] }
 0x1c7   : > { %3034 = vmatpush2.bf16.msra.mxu0 %v3834_v33  ;;  %v3660_v33 = vcombine.low %v476_v15, %v480_v17  ;;  %v3741_v15 = vcombine.high %v556_v10, %v560_v11 }
 0x1c8   : > { %3075 = vmatpush2.bf16.msra.mxu1 %v3580_v34  ;;  %3085 = vmatprep.subr.bf16.mxu0 %v3701_v35  ;;  %v3788_v34 = vcombine.low %v604_v18, %v608_v21  ;;  %v3653_v35 = vcombine.high %v468_v26, %v472_v28  ;;  %v548_v18 = vld [vmem:[%s4429_s11 + $0x6d8] sm:$0xff] }
 0x1c9   : > { %3126 = vmatprep.subr.bf16.mxu1 %v3829_v36  ;;  %v3781_v36 = vcombine.high %v596_v29, %v600_v32  ;;  %v552_v21 = vld [vmem:[%s4429_s11 + $0x6f8] sm:$0xff] }
 0x1ca   : > { %v2791_v47 = vpop.f32.mrf.mxu0  ;;  %3036 = vmatmul.mubr.bf16.vlgmr.msra.gmra.mxu0 %v4592_v31 }
 0x1cb   : > { %v4825_v50 = vadd.f32 %v2791_v47, %v4753_v19  ;;  %v4827_v51 = vpop.f32.mrf.mxu1  ;;  %3077 = vmatmul.mubr.bf16.vlgmr.msra.gmra.mxu1 %v4518_v16  ;;  %3086 = vmatpush1.bf16.msra.mxu0 %v3700_v40  ;;  %v3813_v19 = vcombine.high %v628_v48, %v632_v49  ;;  %v3652_v40 = vcombine.low %v468_v26, %v472_v28  ;;  %v708_v47 = vld [vmem:[%s4429_s11 + $0xbd8] sm:$0xff] }
 0x1cc   : > { %3127 = vmatpush1.bf16.msra.mxu1 %v3828_v41  ;;  %v2793_v54 = vpop.f32.mrf.mxu0  ;;  %3087 = vmatprep.subr.bf16.mxu0 %v3693_v42  ;;  %v3780_v41 = vcombine.low %v596_v29, %v600_v32  ;;  %v3645_v42 = vcombine.high %v460_v37, %v464_v38  ;;  %v712_v48 = vld [vmem:[%s4429_s11 + $0xbf8] sm:$0xff]  ;;  %v3644_v49 = vcombine.low %v460_v37, %v464_v38 }
 0x1cd   : > { %v4831_v61 = vadd.f32 %v2793_v54, %v4761_v30  ;;  %v4833_v62 = vpop.f32.mrf.mxu1  ;;  %3128 = vmatprep.subr.bf16.mxu1 %v3821_v43  ;;  %3117 = vmatprep.mubr.bf16.mxu0 %v4474_v59  ;;  %v3684_v30 = vcombine.low %v500_v45, %v504_v46  ;;  %v3805_v59 = vcombine.high %v620_v1, %v624_v2  ;;  %v580_v45 = vld [vmem:[%s4429_s11 + $0x7d8] sm:$0xff] }
 0x1ce   : > { %v2795_v16 = vpop.f32.mrf.mxu0  ;;  %3158 = vmatprep.mubr.bf16.mxu1 %v4526_v27  ;;  %v3676_v27 = vcombine.low %v492_v63, %v496_v0  ;;  %v3773_v43 = vcombine.high %v588_v39, %v592_v58  ;;  %v584_v46 = vld [vmem:[%s4429_s11 + $0x7f8] sm:$0xff]  ;;  %v3892_v1 = vcombine.low %v708_v47, %v712_v48  ;;  %v3733_v26 = vcombine.high %v548_v18, %v552_v21 }
 0x1cf   : > { %v2836_v3 = vpop.f32.mrf.mxu1  ;;  %3088 = vmatpush1.bf16.msra.mxu0 %v3692_v52  ;;  %v3772_v52 = vcombine.low %v588_v39, %v592_v58  ;;  %v3765_v54 = vcombine.high %v580_v45, %v584_v46  ;;  %v700_v63 = vld [vmem:[%s4429_s11 + $0xb98] sm:$0xff]  ;;  %v3764_v16 = vcombine.low %v580_v45, %v584_v46 }
 0x1d0   : > { %3129 = vmatpush1.bf16.msra.mxu1 %v3820_v56  ;;  %v2796_v4 = vpop.f32.mrf.mxu0  ;;  %3089 = vmatprep.subr.bf16.mxu0 %v3685_v57  ;;  %v3893_v56 = vcombine.high %v708_v47, %v712_v48  ;;  %v572_v57 = vld [vmem:[%s4429_s11 + $0x798] sm:$0xff] }
 0x1d1   : > { %v2837_v7 = vpop.f32.mrf.mxu1  ;;  %3130 = vmatprep.subr.bf16.mxu1 %v3813_v19  ;;  %v576_v19 = vld [vmem:[%s4429_s11 + $0x7b8] sm:$0xff] }
 0x1d2   : > { %v704_v0 = vld [vmem:[%s4429_s11 + $0xbb8] sm:$0xff]  ;;  %v3757_v2 = vcombine.high %v572_v57, %v576_v19  ;;  %v3756_v7 = vcombine.low %v572_v57, %v576_v19  ;;  %v4890_v19 = vsub.s32 2, %v4724_v44 }
 0x1d3   : > { %3090 = vmatpush1.bf16.msra.mxu0 %v3684_v30  ;;  %v3885_v3 = vcombine.high %v700_v63, %v704_v0  ;;  %v564_v30 = vld [vmem:[%s4429_s11 + $0x758] sm:$0xff] }
 0x1d4   : > { %3131 = vmatpush1.bf16.msra.mxu1 %v3812_v5  ;;  %3091 = vmatprep.subr.bf16.mxu0 %v3677_v6  ;;  %v568_v4 = vld [vmem:[%s4429_s11 + $0x778] sm:$0xff] }
 0x1d5   : > { %3132 = vmatprep.subr.bf16.mxu1 %v3805_v59  ;;  %v692_v5 = vld [vmem:[%s4429_s11 + $0xb58] sm:$0xff]  ;;  %v3884_v59 = vcombine.low %v700_v63, %v704_v0  ;;  %v3749_v8 = vcombine.high %v564_v30, %v568_v4  ;;  %v4893_v0 = vsub.s32 3, %v4724_v44 }
 0x1d6   : > { %v696_v6 = vld [vmem:[%s4429_s11 + $0xb78] sm:$0xff] }
 0x1d7   : > { %3092 = vmatpush1.bf16.msra.mxu0 %v3676_v27  ;;  %v3877_v9 = vcombine.high %v692_v5, %v696_v6  ;;  %v684_v27 = vld [vmem:[%s4429_s11 + $0xb18] sm:$0xff] }
 0x1d8   : > { %3133 = vmatpush1.bf16.msra.mxu1 %v3804_v12  ;;  %3093 = vmatprep.subr.bf16.mxu0 %v3669_v13  ;;  %v688_v12 = vld [vmem:[%s4429_s11 + $0xb38] sm:$0xff]  ;;  %v3748_v13 = vcombine.low %v564_v30, %v568_v4 }
 0x1d9   : > { %3134 = vmatprep.subr.bf16.mxu1 %v3797_v14  ;;  %v3876_v14 = vcombine.low %v692_v5, %v696_v6  ;;  %v3869_v17 = vcombine.high %v684_v27, %v688_v12  ;;  %v540_v29 = vld [vmem:[%s4429_s11 + $0x698] sm:$0xff] }
 0x1da   : > { %v544_v32 = vld [vmem:[%s4429_s11 + $0x6b8] sm:$0xff] }
 0x1db   : > { %3094 = vmatpush1.bf16.msra.mxu0 %v3668_v22  ;;  %v676_v22 = vld [vmem:[%s4429_s11 + $0xad8] sm:$0xff]  ;;  %v3725_v37 = vcombine.high %v540_v29, %v544_v32 }
 0x1dc   : > { %3135 = vmatpush1.bf16.msra.mxu1 %v3796_v23  ;;  %3095 = vmatprep.subr.bf16.mxu0 %v3661_v24  ;;  %v680_v23 = vld [vmem:[%s4429_s11 + $0xaf8] sm:$0xff]  ;;  %v3740_v24 = vcombine.low %v556_v10, %v560_v11 }
 0x1dd   : > { %3136 = vmatprep.subr.bf16.mxu1 %v3789_v25  ;;  %v3868_v25 = vcombine.low %v684_v27, %v688_v12  ;;  %v3861_v28 = vcombine.high %v676_v22, %v680_v23  ;;  %v532_v39 = vld [vmem:[%s4429_s11 + $0x658] sm:$0xff] }
 0x1de   : > { %v536_v58 = vld [vmem:[%s4429_s11 + $0x678] sm:$0xff] }
 0x1df   : > { %3096 = vmatpush1.bf16.msra.mxu0 %v3660_v33  ;;  %v668_v33 = vld [vmem:[%s4429_s11 + $0xa98] sm:$0xff]  ;;  %v3717_v45 = vcombine.high %v532_v39, %v536_v58 }
 0x1e0   : > { %3137 = vmatpush1.bf16.msra.mxu1 %v3788_v34  ;;  %3097 = vmatprep.subr.bf16.mxu0 %v3653_v35  ;;  %v672_v34 = vld [vmem:[%s4429_s11 + $0xab8] sm:$0xff]  ;;  %v3732_v35 = vcombine.low %v548_v18, %v552_v21 }
 0x1e1   : > { %3138 = vmatprep.subr.bf16.mxu1 %v3781_v36  ;;  %v3860_v36 = vcombine.low %v676_v22, %v680_v23  ;;  %v3853_v38 = vcombine.high %v668_v33, %v672_v34  ;;  %v524_v47 = vld [vmem:[%s4429_s11 + $0x618] sm:$0xff] }
 0x1e2   : > { %v528_v48 = vld [vmem:[%s4429_s11 + $0x638] sm:$0xff] }
 0x1e3   : > { %3098 = vmatpush1.bf16.msra.mxu0 %v3652_v40  ;;  %v660_v40 = vld [vmem:[%s4429_s11 + $0xa58] sm:$0xff]  ;;  %v3709_v57 = vcombine.high %v524_v47, %v528_v48 }
 0x1e4   : > { %3139 = vmatpush1.bf16.msra.mxu1 %v3780_v41  ;;  %3099 = vmatprep.subr.bf16.mxu0 %v3645_v42  ;;  %v664_v41 = vld [vmem:[%s4429_s11 + $0xa78] sm:$0xff]  ;;  %v3724_v42 = vcombine.low %v540_v29, %v544_v32 }
 0x1e5   : > { %3140 = vmatprep.subr.bf16.mxu1 %v3773_v43  ;;  %v3852_v43 = vcombine.low %v668_v33, %v672_v34  ;;  %v3845_v46 = vcombine.high %v660_v40, %v664_v41 }
 0x1e7   : > { %3100 = vmatpush1.bf16.msra.mxu0 %v3644_v49  ;;  %v652_v49 = vld [vmem:[%s4429_s11 + $0xa18] sm:$0xff] }
 0x1e8   : > { %3141 = vmatpush1.bf16.msra.mxu1 %v3772_v52  ;;  %3101 = vmatprep.subr.bf16.mxu0 %v3765_v54  ;;  %v656_v52 = vld [vmem:[%s4429_s11 + $0xa38] sm:$0xff]  ;;  %v3716_v54 = vcombine.low %v532_v39, %v536_v58 }
 0x1e9   : > { %3142 = vmatprep.subr.bf16.mxu1 %v3893_v56  ;;  %v3844_v56 = vcombine.low %v660_v40, %v664_v41  ;;  %v3837_v63 = vcombine.high %v652_v49, %v656_v52  ;;  %v3168_v40 = vmax.f32 %v4831_v61, 0.0  ;;  %v3167_v41 = vmax.f32 %v4825_v50, 0.0 }
 0x1eb   : > { %3102 = vmatpush2.bf16.msra.mxu0 %v3764_v16  ;;  %v3708_v16 = vcombine.low %v524_v47, %v528_v48  ;;  %v4924_v47 = vsub.s32 7, %v4724_v44 }
 0x1ec   : > { %3143 = vmatpush2.bf16.msra.mxu1 %v3892_v1  ;;  %3103 = vmatprep.subr.bf16.mxu0 %v3757_v2  ;;  %v3836_v1 = vcombine.low %v652_v49, %v656_v52  ;;  %v726_v2 = vrot.slane %v4734_v55, %v4890_v19 }
 0x1ed   : > { %3144 = vmatprep.subr.bf16.mxu1 %v3885_v3  ;;  %v730_v3 = vrot.slane %v4734_v55, %v4893_v0  ;;  %v746_v50 = vrot.slane %v4734_v55, %v4924_v47 }
 0x1ee   : > { %v2833_v30 = vadd.f32 %v4827_v51, %v726_v2 }
 0x1ef   : > { %3104 = vmatpush2.bf16.msra.mxu0 %v3756_v7  ;;  %v2835_v5 = vadd.f32 %v4833_v62, %v730_v3 }
 0x1f0   : > { %3145 = vmatpush2.bf16.msra.mxu1 %v3884_v59  ;;  %3105 = vmatprep.subr.bf16.mxu0 %v3749_v8 }
 0x1f1   : > { %3146 = vmatprep.subr.bf16.mxu1 %v3877_v9 }
 0x1f3   : > { %3106 = vmatpush2.bf16.msra.mxu0 %v3748_v13 }
 0x1f4   : > { %3147 = vmatpush2.bf16.msra.mxu1 %v3876_v14  ;;  %3107 = vmatprep.subr.bf16.mxu0 %v3741_v15  ;;  %v4908_v14 = vsub.s32 4, %v4724_v44 }
 0x1f5   : > { %3148 = vmatprep.subr.bf16.mxu1 %v3869_v17 }
 0x1f7   : > { %3108 = vmatpush2.bf16.msra.mxu0 %v3740_v24 }
 0x1f8   : > { %3149 = vmatpush2.bf16.msra.mxu1 %v3868_v25  ;;  %3109 = vmatprep.subr.bf16.mxu0 %v3733_v26 }
 0x1f9   : > { %3150 = vmatprep.subr.bf16.mxu1 %v3861_v28 }
 0x1fb   : > { %3110 = vmatpush2.bf16.msra.mxu0 %v3732_v35 }
 0x1fc   : > { %3151 = vmatpush2.bf16.msra.mxu1 %v3860_v36  ;;  %3111 = vmatprep.subr.bf16.mxu0 %v3725_v37 }
 0x1fd   : > { %3152 = vmatprep.subr.bf16.mxu1 %v3853_v38 }
 0x1ff   : > { %3112 = vmatpush2.bf16.msra.mxu0 %v3724_v42 }
 0x200   : > { %3153 = vmatpush2.bf16.msra.mxu1 %v3852_v43  ;;  %3113 = vmatprep.subr.bf16.mxu0 %v3717_v45  ;;  %v4921_v43 = vsub.s32 6, %v4724_v44  ;;  %v3175_v45 = vadd.f32 %v3168_v40, %v3167_v41 }
 0x201   : > { %3154 = vmatprep.subr.bf16.mxu1 %v3845_v46 }
 0x202   : > { %v742_v52 = vrot.slane %v4734_v55, %v4921_v43 }
 0x203   : > { %3114 = vmatpush2.bf16.msra.mxu0 %v3716_v54 }
 0x204   : > { %3155 = vmatpush2.bf16.msra.mxu1 %v3844_v56  ;;  %3115 = vmatprep.subr.bf16.mxu0 %v3709_v57 }
 0x205   : > { %3156 = vmatprep.subr.bf16.mxu1 %v3837_v63 }
 0x207   : > { %3116 = vmatpush2.bf16.msra.mxu0 %v3708_v16 }
 0x208   : > { %3157 = vmatpush2.bf16.msra.mxu1 %v3836_v1 }
 0x20a   : > { %v2873_v4 = vpop.f32.mrf.mxu0  ;;  %3118 = vmatmul.mubr.bf16.vlgmr.msra.gmra.mxu0 %v4522_v20  ;;  %v4911_v20 = vsub.s32 5, %v4724_v44 }
 0x20b   : > { %v2874_v6 = vadd.f32 %v2873_v4, %v2833_v30  ;;  %v2914_v7 = vpop.f32.mrf.mxu1  ;;  %3159 = vmatmul.mubr.bf16.vlgmr.msra.gmra.mxu1 %v4592_v31  ;;  %v734_v31 = vrot.slane %v4734_v55, %v4908_v14 }
 0x20c   : > { %v2875_v59 = vpop.f32.mrf.mxu0  ;;  %v738_v62 = vrot.slane %v4734_v55, %v4911_v20 }
 0x20d   : > { %v4903_v8 = vadd.f32 %v2914_v7, %v2874_v6  ;;  %v2876_v9 = vadd.f32 %v2875_v59, %v2835_v5  ;;  %v2916_v10 = vpop.f32.mrf.mxu1 }
 0x20e   : > { %v2877_v11 = vpop.f32.mrf.mxu0 }
 0x20f   : > { %v4905_v27 = vadd.f32 %v2916_v10, %v2876_v9  ;;  %v2918_v12 = vpop.f32.mrf.mxu1  ;;  %v3169_v42 = vmax.f32 %v4903_v8, 0.0 }
 0x210   : > { %v2878_v13 = vpop.f32.mrf.mxu0 }
 0x211   : > { %v2919_v51 = vpop.f32.mrf.mxu1  ;;  %v3176_v48 = vadd.f32 %v3175_v45, %v3169_v42  ;;  %v3170_v49 = vmax.f32 %v4905_v27, 0.0 }
 0x213   : > { %v3177_v56 = vadd.f32 %v3176_v48, %v3170_v49  ;;  %v3222_v48 = vld [vmem:[#allocation8] sm:$0xff] }
 0x24a   : > { %v2955_v15 = vpop.f32.mrf.mxu0 }
 0x24b   : > { %v2956_v17 = vadd.f32 %v2955_v15, %v734_v31  ;;  %v2996_v18 = vpop.f32.mrf.mxu1 }
 0x24c   : > { %v2957_v21 = vpop.f32.mrf.mxu0 }
 0x24d   : > { %v2997_v22 = vadd.f32 %v2996_v18, %v2956_v17  ;;  %v2958_v23 = vadd.f32 %v2957_v21, %v738_v62  ;;  %v2998_v24 = vpop.f32.mrf.mxu1 }
 0x24e   : > { %v2959_v25 = vpop.f32.mrf.mxu0 }
 0x24f   : > { %v2999_v26 = vadd.f32 %v2998_v24, %v2958_v23  ;;  %v3000_v28 = vpop.f32.mrf.mxu1 }
 0x250   : > { %v2960_v29 = vpop.f32.mrf.mxu0 }
 0x251   : > { %v3001_v32 = vpop.f32.mrf.mxu1 }
 0x28a   : > { %v3037_v33 = vpop.f32.mrf.mxu0 }
 0x28b   : > { %v3078_v34 = vpop.f32.mrf.mxu1  ;;  %v3038_v46 = vadd.f32 %v3037_v33, %v2997_v22 }
 0x28c   : > { %v3039_v35 = vpop.f32.mrf.mxu0  ;;  %v3079_v57 = vadd.f32 %v3078_v34, %v742_v52  ;;  %v3227_v52 = vrot.slane %v3222_v48, %v4731_v53 }
 0x28d   : > { %v3080_v36 = vpop.f32.mrf.mxu1  ;;  %v3171_v54 = vmax.f32 %v3038_v46, 0.0  ;;  %v3040_v61 = vadd.f32 %v3039_v35, %v2999_v26 }
 0x28e   : > { %v3041_v37 = vpop.f32.mrf.mxu0  ;;  %v3081_v2 = vadd.f32 %v3080_v36, %v746_v50 }
 0x28f   : > { %v3082_v38 = vpop.f32.mrf.mxu1  ;;  %v3178_v16 = vadd.f32 %v3177_v56, %v3171_v54  ;;  %v3172_v1 = vmax.f32 %v3040_v61, 0.0  ;;  %v3231_v61 = vrot.slane %v3222_v48, %v4737_v60  ;;  %v3235_v56 = vrot.slane %v3222_v48, %v4890_v19 }
 0x290   : > { %v3042_v39 = vpop.f32.mrf.mxu0 }
 0x291   : > { %v3083_v58 = vpop.f32.mrf.mxu1  ;;  %v3179_v59 = vadd.f32 %v3178_v16, %v3172_v1 }
 0x2ca   : > { %v3119_v63 = vpop.f32.mrf.mxu0 }
 0x2cb   : > { %v3120_v3 = vadd.f32 %v3119_v63, %v3079_v57  ;;  %v3160_v44 = vpop.f32.mrf.mxu1  ;;  %v3239_v63 = vrot.slane %v3222_v48, %v4893_v0 }
 0x2cc   : > { %v3121_v30 = vpop.f32.mrf.mxu0 }
 0x2cd   : > { %v3161_v4 = vadd.f32 %v3160_v44, %v3120_v3  ;;  %v3122_v5 = vadd.f32 %v3121_v30, %v3081_v2  ;;  %v3162_v6 = vpop.f32.mrf.mxu1  ;;  %v3247_v3 = vrot.slane %v3222_v48, %v4911_v20 }
 0x2ce   : > { %v3123_v7 = vpop.f32.mrf.mxu0 }
 0x2cf   : > { %v3173_v8 = vmax.f32 %v3161_v4, 0.0  ;;  %v3163_v9 = vadd.f32 %v3162_v6, %v3122_v5  ;;  %v3164_v10 = vpop.f32.mrf.mxu1 }
 0x2d0   : > { %v3124_v11 = vpop.f32.mrf.mxu0 }
 0x2d1   : > { %v3174_v27 = vmax.f32 %v3163_v9, 0.0  ;;  %v3165_v55 = vpop.f32.mrf.mxu1  ;;  %v3180_v12 = vadd.f32 %v3179_v59, %v3173_v8 }
 0x2d3   : > { %v3181_v13 = vadd.f32 %v3180_v12, %v3174_v27 }
 0x2d5   : > { %3182 = vadd.xlane.f32.xlu0 %v3181_v13 }
 0x35e   : > { %v3183_v51 = vpop.xlane.xlu0 %3182 }
 0x35f   : > { %v3185_v31 = vmul.f32 0.0009765625, %v3183_v51 }
 0x361   : > { %v3186_v62 = vsub.f32 %v3167_v41, %v3185_v31  ;;  %v3187_v15 = vsub.f32 %v3168_v40, %v3185_v31  ;;  %v3188_v17 = vsub.f32 %v3169_v42, %v3185_v31  ;;  %v3189_v18 = vsub.f32 %v3170_v49, %v3185_v31  ;;  %v3272_v49 = vld [vmem:[#allocation10] sm:$0xff] }
 0x362   : > { %v3190_v23 = vsub.f32 %v3171_v54, %v3185_v31  ;;  %v3191_v26 = vsub.f32 %v3172_v1, %v3185_v31  ;;  %v3192_v32 = vsub.f32 %v3173_v8, %v3185_v31  ;;  %v3193_v35 = vsub.f32 %v3174_v27, %v3185_v31 }
 0x363   : > { %v3194_v21 = vmul.f32 %v3186_v62, %v3186_v62  ;;  %v3195_v22 = vmul.f32 %v3187_v15, %v3187_v15  ;;  %v3196_v24 = vmul.f32 %v3188_v17, %v3188_v17  ;;  %v3197_v28 = vmul.f32 %v3189_v18, %v3189_v18 }
 0x364   : > { %v3198_v33 = vmul.f32 %v3190_v23, %v3190_v23  ;;  %v3199_v36 = vmul.f32 %v3191_v26, %v3191_v26  ;;  %v3200_v38 = vmul.f32 %v3192_v32, %v3192_v32  ;;  %v3201_v58 = vmul.f32 %v3193_v35, %v3193_v35 }
 0x365   : > { %v3202_v25 = vadd.f32 %v3195_v22, %v3194_v21  ;;  %v3277_v54 = vrot.slane %v3272_v49, %v4731_v53  ;;  %v3281_v50 = vrot.slane %v3272_v49, %v4737_v60  ;;  %v3285_v57 = vrot.slane %v3272_v49, %v4890_v19 }
 0x366   : > { %v3289_v16 = vrot.slane %v3272_v49, %v4893_v0  ;;  %v3243_v1 = vrot.slane %v3222_v48, %v4908_v14  ;;  %v3293_v2 = vrot.slane %v3272_v49, %v4908_v14  ;;  %v3297_v53 = vrot.slane %v3272_v49, %v4911_v20 }
 0x367   : > { %v3203_v29 = vadd.f32 %v3202_v25, %v3196_v24  ;;  %v3251_v60 = vrot.slane %v3222_v48, %v4921_v43  ;;  %v3301_v30 = vrot.slane %v3272_v49, %v4921_v43  ;;  %v3255_v19 = vrot.slane %v3222_v48, %v4924_v47 }
 0x368   : > { %v3305_v4 = vrot.slane %v3272_v49, %v4924_v47 }
 0x369   : > { %v3204_v34 = vadd.f32 %v3203_v29, %v3197_v28 }
 0x36b   : > { %v3205_v37 = vadd.f32 %v3204_v34, %v3198_v33 }
 0x36d   : > { %v3206_v39 = vadd.f32 %v3205_v37, %v3199_v36 }
 0x36f   : > { %v3207_v40 = vadd.f32 %v3206_v39, %v3200_v38 }
 0x371   : > { %v3208_v41 = vadd.f32 %v3207_v40, %v3201_v58 }
 0x373   : > { %3209 = vadd.xlane.f32.xlu0 %v3208_v41 }
 0x3fc   : > { %v3210_v42 = vpop.xlane.xlu0 %3209 }
 0x3fd   : > { %v3211_v45 = vmul.f32 0.0009765625, %v3210_v42 }
 0x3ff   : > { %v3212_v46 = vadd.f32 1e-05, %v3211_v45 }
 0x401   : > { %3996 = vrsqrt.f32 %v3212_v46 }
 0x40e   : > { %v3997_v44 = vpop.eup %3996 }
 0x40f   : > { %v3214_v5 = vmul.f32 %v3997_v44, %v3186_v62  ;;  %v3215_v0 = vmul.f32 %v3997_v44, %v3187_v15  ;;  %v3216_v6 = vmul.f32 %v3997_v44, %v3188_v17  ;;  %v3217_v7 = vmul.f32 %v3997_v44, %v3189_v18 }
 0x410   : > { %v3218_v59 = vmul.f32 %v3997_v44, %v3190_v23  ;;  %v3219_v14 = vmul.f32 %v3997_v44, %v3191_v26  ;;  %v3220_v8 = vmul.f32 %v3997_v44, %v3192_v32  ;;  %v3221_v9 = vmul.f32 %v3997_v44, %v3193_v35 }
 0x411   : > { %v3264_v20 = vmul.f32 %v3227_v52, %v3214_v5  ;;  %v3265_v10 = vmul.f32 %v3231_v61, %v3215_v0  ;;  %v3266_v11 = vmul.f32 %v3235_v56, %v3216_v6  ;;  %v3267_v27 = vmul.f32 %v3239_v63, %v3217_v7 }
 0x412   : > { %v3268_v55 = vmul.f32 %v3243_v1, %v3218_v59  ;;  %v3269_v12 = vmul.f32 %v3247_v3, %v3219_v14  ;;  %v3270_v43 = vmul.f32 %v3251_v60, %v3220_v8  ;;  %v3271_v13 = vmul.f32 %v3255_v19, %v3221_v9 }
 0x413   : > { %v3314_v51 = vadd.f32 %v3277_v54, %v3264_v20  ;;  %v3315_v31 = vadd.f32 %v3281_v50, %v3265_v10  ;;  %v3316_v47 = vadd.f32 %v3285_v57, %v3266_v11  ;;  %v3317_v62 = vadd.f32 %v3289_v16, %v3267_v27 }
 0x414   : > { %v3318_v15 = vadd.f32 %v3293_v2, %v3268_v55  ;;  %v3319_v17 = vadd.f32 %v3297_v53, %v3269_v12  ;;  %v3320_v18 = vadd.f32 %v3301_v30, %v3270_v43  ;;  %v3321_v21 = vadd.f32 %v3305_v4, %v3271_v13 }
 0x415   : > { %v3904_v22 = vpack.c.bf16 %v3315_v31, %v3314_v51  ;;  %v3905_v23 = vpack.c.bf16 %v3317_v62, %v3316_v47 }
 0x416   : > { %v3906_v24 = vpack.c.bf16 %v3319_v17, %v3318_v15  ;;  %v3907_v25 = vpack.c.bf16 %v3321_v21, %v3320_v18 }
 0x417   : > { %3354 = vst [vmem:[%s315_s6] sm:$0xff] %v3904_v22  ;;  %3355 = vst [vmem:[%s315_s6 + $0x8] sm:$0xff] %v3905_v23 }
 0x418   : > { %3356 = vst [vmem:[%s315_s6 + $0x10] sm:$0xff] %v3906_v24  ;;  %3357 = vst [vmem:[%s315_s6 + $0x18] sm:$0xff] %v3907_v25 }
 0x419   : > { %4145 = shalt.err (!%p4142_p3)
}
 0x41a   : > { %s4146_s30 = scalar_lea.hbm %s4952_s7, 512  ;;  %s4150_s11 = scalar_lea.hbm %s5000_s5, 1024 }
 0x41b   : > { %p4147_p5 = scmp.ne.s32.totalorder %s4952_s7, %s4146_s30  ;;  %p4151_p7 = scmp.lt.s32.totalorder %s4952_s7, %s5000_s5 }
 0x41c   : > { %p4152_p12 = scmp.lt.s32.totalorder %s4150_s11, %s4146_s30 }
 0x41d   : > { %p4148_p11 = pnand %p4147_p5, %p5026_p6 }
 0x41e   : > { %p4153_p10 = por %p4152_p12, %p4151_p7 }
 0x41f   : > { %p4149_p13 = pneg %p4148_p11 }
 0x421   : > { %p4154_p2 = pnand %p4153_p10, %p4149_p13 }
 0x423   : > { %4157 = shalt.err (!%p4154_p2)
}
 0x424   : > { %3928 = dma.vmem_to_hbm [thread:$0]  (%p5026_p6), %s4954_s1, 512, %s4952_s7, %s3359_s22  }
 0x425 PF: > { %s3385_s24 = sand.u32 1, %s4192_s18   ;;  %p5027_p4 = scmp.ne.s32.totalorder %s5009_s25, 0 }
 0x426   : > { %p5028_p8 = scmp.ge.s32.totalorder %s4204_s21, 2  ;;  %s3386_s28 = scalar_lea.sflag [#allocation4], %s3385_s24 }
 0x428   : > { %p3948_p0 = pnand %p5028_p8, %p5027_p4 }
 0x42a   : > { %p3949_p9 = pneg %p3948_p0 }
 0x42c   : > { %4187 = dma.done.wait (%p3949_p9), %s3386_s28, 512  }
 0x42d   : > { %4189 = vsyncadd (%p3949_p9), %s3386_s28, 4294966784  ;;  %p20_p1 = scmp.ge.s32.totalorder %s4292_s29, 4   ;;  %s5029_s18 = smov %s4196_s19 }
 0x42e   : > { %s5030_s19 = smov %s4200_s20  ;;  %s5031_s20 = smov %s4322_s12 }
 0x42f   : > { %s5032_s21 = smov %s4292_s29  ;;  %22 = sbr.rel (!%p20_p1) target bundleno = 9 (0x9), region = 109 }
 0x434   :  { %3391 = vsyncpa [#allocation3], 1 }
 0x435   :  { %3393 = vsyncpa [#allocation3 + $0x1], 1 }
 0x436   :  { %3394 = vsyncpa [#allocation6], 1 }
 0x437   :  { %3396 = vsyncpa [#allocation6 + $0x1], 1 }
 0x438   :  { %3397 = vsyncpa [#allocation9], 1 }
 0x439   :  { %3398 = vsyncpa [#allocation4], 1 }
 0x43a   :  { %3400 = vsyncpa [#allocation4 + $0x1], 1 }

</bundles_post_ra>
